<compile_context>
chip_gen: v5e
topology: v5e:2x2
jax: 0.10.0
libtpu: 0.0.40
codegen_flags: <defaults>
</compile_context>

<pallas_src>
import functools

import jax
import jax.numpy as jnp
from jax import lax
from jax.experimental import pallas as pl
from jax.experimental.pallas import tpu as pltpu


# ---------------------------------------------------------------------------
# Fused Pallas kernel: Bt batch elements per grid step, flattened NCHW layout
# ---------------------------------------------------------------------------
def _sab_kernel(x_ref, wq_ref, wk_ref, wv_ref, bv_ref,
                sq_ref, bq_ref, sk_ref, bk_ref, gamma_ref, o_ref,
                *, H, W, C, C8, Bt):
    """x_ref : (Bt, C, HW) f32   input tile (C on sublanes, HW on lanes)
       wq_ref: (3, C8, C) bf16   query conv (1,3) weights, per tap, (out,in)
       wk_ref: (3, C8, C) bf16   key   conv (3,1) weights, per tap, (out,in)
       wv_ref: (C, C)     bf16   value 1x1 conv weight, (out,in)
       bv_ref: (C, 1)     f32    value conv bias
       sq/bq : (C8, 1)    f32    folded BN scale/bias for query (conv bias folded)
       sk/bk : (C8, 1)    f32    folded BN scale/bias for key
       gamma : (1,)       f32    residual scale (SMEM scalar)
       o_ref : (Bt, C, HW) f32
    """
    HW = H * W
    gamma = gamma_ref[0]

    # Boundary masks for the conv taps (per flat HW position, shared across Bt).
    pos = lax.broadcasted_iota(jnp.int32, (1, HW), 1)
    w_pos = pos % W
    m_wm1 = w_pos != 0            # tap x[.., w-1] valid
    m_wp1 = w_pos != W - 1        # tap x[.., w+1] valid
    m_hm1 = pos >= W              # tap x[h-1, ..] valid
    m_hp1 = pos < (H - 1) * W     # tap x[h+1, ..] valid

    wq0, wq1, wq2 = wq_ref[0], wq_ref[1], wq_ref[2]      # (C8, C) bf16
    wk0, wk1, wk2 = wk_ref[0], wk_ref[1], wk_ref[2]
    wv = wv_ref[...]                                     # (C, C) bf16
    ones_row = jnp.ones((1, HW), jnp.bfloat16)

    for b in range(Bt):
        x = x_ref[b]                        # (C, HW) f32
        xb = x.astype(jnp.bfloat16)

        # ---- query: Conv2d kernel (1,3), padding (0,1).  Per-tap matmul on the
        # un-shifted input, then roll the small (C8, HW) result and mask edges.
        yq0 = jnp.dot(wq0, xb, preferred_element_type=jnp.float32)
        yq1 = jnp.dot(wq1, xb, preferred_element_type=jnp.float32)
        yq2 = jnp.dot(wq2, xb, preferred_element_type=jnp.float32)
        q = (yq1
             + jnp.where(m_wm1, pltpu.roll(yq0, shift=1, axis=1), 0.0)
             + jnp.where(m_wp1, pltpu.roll(yq2, shift=HW - 1, axis=1), 0.0))
        q = jnp.maximum(q * sq_ref[...] + bq_ref[...], 0.0)         # BN + ReLU (f32)

        # ---- key: Conv2d kernel (3,1), padding (1,0) -> shifts of +-W positions.
        yk0 = jnp.dot(wk0, xb, preferred_element_type=jnp.float32)
        yk1 = jnp.dot(wk1, xb, preferred_element_type=jnp.float32)
        yk2 = jnp.dot(wk2, xb, preferred_element_type=jnp.float32)
        k = (yk1
             + jnp.where(m_hm1, pltpu.roll(yk0, shift=W, axis=1), 0.0)
             + jnp.where(m_hp1, pltpu.roll(yk2, shift=HW - W, axis=1), 0.0))
        k = jnp.maximum(k * sk_ref[...] + bk_ref[...], 0.0)         # BN + ReLU (f32)

        # ---- value: 1x1 conv with bias -> (C, HW) f32
        v = jnp.dot(wv, xb, preferred_element_type=jnp.float32) + bv_ref[...]

        # ---- affinity[i, j] = <q[:, i], k[:, j]>  -> (HW, HW), lane-dense
        aff = lax.dot_general(q.astype(jnp.bfloat16), k.astype(jnp.bfloat16),
                              dimension_numbers=(((0,), (0,)), ((), ())),
                              preferred_element_type=jnp.float32)
        aff = aff - jnp.max(aff, axis=-1, keepdims=True)
        p = jnp.exp(aff).astype(jnp.bfloat16)           # unnormalized probabilities

        # ---- deferred softmax normalization:
        #   wts_unnorm[c, i] = sum_j v[c, j] * p[i, j]
        #   denom[0, i]      = sum_j p[i, j]      (1-row ones matmul, f32 accumulate)
        wts_unnorm = lax.dot_general(v.astype(jnp.bfloat16), p,
                                     dimension_numbers=(((1,), (1,)), ((), ())),
                                     preferred_element_type=jnp.float32)
        denom = lax.dot_general(ones_row, p,
                                dimension_numbers=(((1,), (1,)), ((), ())),
                                preferred_element_type=jnp.float32)   # (1, HW)
        wts = wts_unnorm * pl.reciprocal(denom, approx=True)

        o_ref[b] = gamma * wts + x                        # residual, f32, lane-dense


# ---------------------------------------------------------------------------
# Wrapper (PyTorch NCHW in / NCHW out — only free reshapes, no transposes)
# ---------------------------------------------------------------------------
def spatial_attention_block(params, x_nchw):
    x = x_nchw.astype(jnp.float32)
    B, C, H, W = x.shape
    HW = H * W
    C8 = params["wq"].shape[-1]
    x_flat = x.reshape(B, C, HW)

    # Batch tile per grid step: amortize per-step overhead, but keep >= 2 grid
    # steps whenever B >= 2 so both v7x TensorCores get parallel work.
    if B >= 8:
        Bt = 4
    elif B >= 4:
        Bt = 2
    else:
        Bt = 1
    while B % Bt:
        Bt -= 1

    wq = jnp.transpose(params["wq"], (0, 2, 1)).astype(jnp.bfloat16)   # (3, C8, C)
    wk = jnp.transpose(params["wk"], (0, 2, 1)).astype(jnp.bfloat16)   # (3, C8, C)
    wv = jnp.transpose(params["wv"]).astype(jnp.bfloat16)              # (C_out, C_in)
    bv = params["bv"].reshape(C, 1).astype(jnp.float32)
    sq = params["q_scale"].reshape(C8, 1).astype(jnp.float32)
    bq = params["q_bias"].reshape(C8, 1).astype(jnp.float32)
    sk = params["k_scale"].reshape(C8, 1).astype(jnp.float32)
    bk = params["k_bias"].reshape(C8, 1).astype(jnp.float32)
    gamma = params["gamma"].reshape(1).astype(jnp.float32)

    flops_per_img = (2 * 3 * C8 * C * HW          # query conv taps
                     + 2 * 3 * C8 * C * HW        # key conv taps
                     + 2 * C * C * HW             # value 1x1
                     + 2 * HW * HW * C8           # affinity
                     + 2 * HW * HW * (C + 1))     # PV + denominator
    bytes_accessed = (2 * B * C * HW * 4
                      + (wq.size + wk.size + wv.size) * 2
                      + (bv.size + sq.size + bq.size + sk.size + bk.size + 1) * 4)

    kernel = functools.partial(_sab_kernel, H=H, W=W, C=C, C8=C8, Bt=Bt)
    out_flat = pl.pallas_call(
        kernel,
        out_shape=jax.ShapeDtypeStruct((B, C, HW), jnp.float32),
        grid=(B // Bt,),
        in_specs=[
            pl.BlockSpec((Bt, C, HW), lambda b: (b, 0, 0)),
            pl.BlockSpec((3, C8, C), lambda b: (0, 0, 0)),
            pl.BlockSpec((3, C8, C), lambda b: (0, 0, 0)),
            pl.BlockSpec((C, C), lambda b: (0, 0)),
            pl.BlockSpec((C, 1), lambda b: (0, 0)),
            pl.BlockSpec((C8, 1), lambda b: (0, 0)),
            pl.BlockSpec((C8, 1), lambda b: (0, 0)),
            pl.BlockSpec((C8, 1), lambda b: (0, 0)),
            pl.BlockSpec((C8, 1), lambda b: (0, 0)),
            pl.BlockSpec(memory_space=pltpu.MemorySpace.SMEM),      # gamma scalar
        ],
        out_specs=pl.BlockSpec((Bt, C, HW), lambda b: (b, 0, 0)),
        compiler_params=pltpu.CompilerParams(
            dimension_semantics=("parallel",),       # megacore sharding on v7x
            vmem_limit_bytes=32 * 1024 * 1024,
        ),
        cost_estimate=pl.CostEstimate(flops=B * flops_per_img,
                                      transcendentals=B * (HW * HW + HW),
                                      bytes_accessed=bytes_accessed),
    )(x_flat, wq, wk, wv, bv, sq, bq, sk, bk, gamma)

    return out_flat.reshape(B, C, H, W)


# ---------------------------------------------------------------------------
# Deterministic synthetic parameters (conv + eval-mode BN folded)
# ---------------------------------------------------------------------------
def sab_init(key, in_channels, *, gamma=0.1):
    C = in_channels
    C8 = C // 8
    assert C8 >= 1, "in_channels must be >= 8 (PyTorch module needs C//8 >= 1)"
    ks = jax.random.split(key, 3)

    wq = jax.random.normal(ks[0], (3, C, C8), jnp.float32) / jnp.sqrt(3.0 * C)
    wk = jax.random.normal(ks[1], (3, C, C8), jnp.float32) / jnp.sqrt(3.0 * C)
    wv = jax.random.normal(ks[2], (C, C), jnp.float32) / jnp.sqrt(float(C))
    bv = 0.01 * jnp.arange(C, dtype=jnp.float32) - 0.02
    bq_conv = 0.01 * jnp.arange(C8, dtype=jnp.float32)
    bk_conv = -0.01 * jnp.arange(C8, dtype=jnp.float32)

    def fold_bn(conv_bias, n):
        idx = jnp.arange(n, dtype=jnp.float32)
        g = 1.0 + 0.01 * idx
        beta = 0.02 * idx - 0.05
        mean = 0.01 * idx
        var = 1.0 + 0.05 * idx
        scale = g * lax.rsqrt(var + 1e-5)
        bias = beta + scale * (conv_bias - mean)     # conv bias folded into BN bias
        return scale, bias

    q_scale, q_bias = fold_bn(bq_conv, C8)
    k_scale, k_bias = fold_bn(bk_conv, C8)

    # NOTE: PyTorch initializes gamma to 0 (out == x). A non-zero synthetic gamma is
    # used here so the attention path is actually exercised; semantics unchanged.
    return {"wq": wq, "wk": wk, "wv": wv, "bv": bv,
            "q_scale": q_scale, "q_bias": q_bias,
            "k_scale": k_scale, "k_bias": k_bias,
            "gamma": jnp.array([gamma], jnp.float32)}


# ---------------------------------------------------------------------------
# Pure-JAX (f32) reference for correctness checking
# ---------------------------------------------------------------------------
def sab_reference(params, x_nchw):
    x = jnp.transpose(x_nchw, (0, 2, 3, 1)).astype(jnp.float32)       # NHWC
    B, H, W, C = x.shape
    C8 = params["wq"].shape[-1]
    HW = H * W

    xq = jnp.pad(x, ((0, 0), (0, 0), (1, 1), (0, 0)))
    q = sum(jnp.einsum("bhwc,cd->bhwd", xq[:, :, t:t + W, :], params["wq"][t])
            for t in range(3))
    q = jnp.maximum(q * params["q_scale"] + params["q_bias"], 0.0)

    xk = jnp.pad(x, ((0, 0), (1, 1), (0, 0), (0, 0)))
    k = sum(jnp.einsum("bhwc,cd->bhwd", xk[:, t:t + H, :, :], params["wk"][t])
            for t in range(3))
    k = jnp.maximum(k * params["k_scale"] + params["k_bias"], 0.0)

    v = jnp.einsum("bhwc,cd->bhwd", x, params["wv"]) + params["bv"]

    qf = q.reshape(B, HW, C8)
    kf = k.reshape(B, HW, C8)
    vf = v.reshape(B, HW, C)
    aff = jax.nn.softmax(jnp.einsum("bic,bjc->bij", qf, kf), axis=-1)
    wts = jnp.einsum("bij,bjc->bic", aff, vf)
    out = params["gamma"][0] * wts + x.reshape(B, HW, C)
    return jnp.transpose(out.reshape(B, H, W, C), (0, 3, 1, 2))


# ---------------------------------------------------------------------------
if __name__ == "__main__":
    key = jax.random.PRNGKey(0)
    k_x, k_p = jax.random.split(key)

    B, C, H, W = 2, 32, 16, 16           # in_channels=32 -> C//8 = 4
    x = jax.random.normal(k_x, (B, C, H, W), jnp.float32)
    params = sab_init(k_p, C, gamma=0.1)

    out = spatial_attention_block(params, x)
    out = jax.block_until_ready(out)

    assert out.shape == (B, C, H, W), out.shape
    assert bool(jnp.all(jnp.isfinite(out)))

    ref = sab_reference(params, x)
    max_err = float(jnp.max(jnp.abs(out - ref)))
    # bf16 matmul inputs + approx reciprocal: typical error ~1e-3, bound at 5e-2.
    assert max_err < 5e-2, f"max abs error vs f32 reference: {max_err}"

    print("KERNEL_OK")
</pallas_src>

<mosaic_0001>
module attributes {stable_mosaic.version = 11 : i64} {
  func.func @_sab_kernel(%arg0: i32, %arg1: memref<1x32x256xf32, #tpu.memory_space<vmem>>, %arg2: memref<3x4x32xbf16, #tpu.memory_space<vmem>>, %arg3: memref<3x4x32xbf16, #tpu.memory_space<vmem>>, %arg4: memref<32x32xbf16, #tpu.memory_space<vmem>>, %arg5: memref<32x1xf32, #tpu.memory_space<vmem>>, %arg6: memref<4x1xf32, #tpu.memory_space<vmem>>, %arg7: memref<4x1xf32, #tpu.memory_space<vmem>>, %arg8: memref<4x1xf32, #tpu.memory_space<vmem>>, %arg9: memref<4x1xf32, #tpu.memory_space<vmem>>, %arg10: memref<1xf32, #tpu.memory_space<smem>>, %arg11: memref<1x32x256xf32, #tpu.memory_space<vmem>>) attributes {dimension_semantics = [#tpu.dimension_semantics<parallel>], iteration_bounds = array<i64: 2>, scalar_prefetch = 0 : i64, scratch_operands = 0 : i64, tpu.core_type = #tpu.core_type<tc>, window_params = [{transform_indices = @transform_0, window_bounds = array<i64: 1, 32, 256>}, {pipeline_mode = #tpu.pipeline_mode<synchronous>, transform_indices = @transform_1, window_bounds = array<i64: 3, 4, 32>}, {pipeline_mode = #tpu.pipeline_mode<synchronous>, transform_indices = @transform_2, window_bounds = array<i64: 3, 4, 32>}, {pipeline_mode = #tpu.pipeline_mode<synchronous>, transform_indices = @transform_3, window_bounds = array<i64: 32, 32>}, {pipeline_mode = #tpu.pipeline_mode<synchronous>, transform_indices = @transform_4, window_bounds = array<i64: 32, 1>}, {pipeline_mode = #tpu.pipeline_mode<synchronous>, transform_indices = @transform_5, window_bounds = array<i64: 4, 1>}, {pipeline_mode = #tpu.pipeline_mode<synchronous>, transform_indices = @transform_6, window_bounds = array<i64: 4, 1>}, {pipeline_mode = #tpu.pipeline_mode<synchronous>, transform_indices = @transform_7, window_bounds = array<i64: 4, 1>}, {pipeline_mode = #tpu.pipeline_mode<synchronous>, transform_indices = @transform_8, window_bounds = array<i64: 4, 1>}, {transform_indices = @transform_9, window_bounds = array<i64: 1>}, {transform_indices = @transform_10, window_bounds = array<i64: 1, 32, 256>}]} {
    %c0 = arith.constant 0 : index
    %0 = memref.load %arg10[%c0] : memref<1xf32, #tpu.memory_space<smem>>
    %1 = tpu.iota {dimensions = array<i32: 1>} : vector<1x256xi32>
    %c16_i32 = arith.constant 16 : i32
    %c0_i32 = arith.constant 0 : i32
    %2 = arith.cmpi eq, %c16_i32, %c0_i32 : i32
    %c1_i32 = arith.constant 1 : i32
    %3 = arith.select %2, %c1_i32, %c16_i32 : i32
    %4 = vector.broadcast %3 : i32 to vector<1x256xi32>
    %5 = arith.remsi %1, %4 : vector<1x256xi32>
    %c0_i32_0 = arith.constant 0 : i32
    %6 = vector.broadcast %c0_i32_0 : i32 to vector<1x256xi32>
    %7 = arith.cmpi ne, %5, %6 : vector<1x256xi32>
    %c0_i32_1 = arith.constant 0 : i32
    %8 = vector.broadcast %c0_i32_1 : i32 to vector<1x256xi32>
    %9 = arith.cmpi slt, %5, %8 : vector<1x256xi32>
    %c0_i32_2 = arith.constant 0 : i32
    %10 = arith.cmpi slt, %3, %c0_i32_2 : i32
    %11 = vector.broadcast %10 : i1 to vector<1x256xi1>
    %12 = vector.broadcast %11 : vector<1x256xi1> to vector<1x256xi1>
    %13 = arith.xori %9, %12 : vector<1x256xi1>
    %14 = arith.andi %13, %7 : vector<1x256xi1>
    %15 = vector.broadcast %3 : i32 to vector<1x256xi32>
    %16 = arith.addi %5, %15 : vector<1x256xi32>
    %17 = arith.select %14, %16, %5 : vector<1x256xi1>, vector<1x256xi32>
    %c0_i32_3 = arith.constant 0 : i32
    %18 = vector.broadcast %c0_i32_3 : i32 to vector<1x256xi32>
    %19 = arith.cmpi ne, %17, %18 : vector<1x256xi32>
    %c15_i32 = arith.constant 15 : i32
    %20 = vector.broadcast %c15_i32 : i32 to vector<1x256xi32>
    %21 = arith.cmpi ne, %17, %20 : vector<1x256xi32>
    %c16_i32_4 = arith.constant 16 : i32
    %22 = vector.broadcast %c16_i32_4 : i32 to vector<1x256xi32>
    %23 = arith.cmpi sge, %1, %22 : vector<1x256xi32>
    %c240_i32 = arith.constant 240 : i32
    %24 = vector.broadcast %c240_i32 : i32 to vector<1x256xi32>
    %25 = arith.cmpi slt, %1, %24 : vector<1x256xi32>
    %c0_5 = arith.constant 0 : index
    %c0_6 = arith.constant 0 : index
    %c0_7 = arith.constant 0 : index
    %26 = vector.load %arg2[%c0_5, %c0_6, %c0_7] : memref<3x4x32xbf16, #tpu.memory_space<vmem>>, vector<1x4x32xbf16>
    %27 = vector.shape_cast %26 : vector<1x4x32xbf16> to vector<4x32xbf16>
    %c1 = arith.constant 1 : index
    %c0_8 = arith.constant 0 : index
    %c0_9 = arith.constant 0 : index
    %28 = vector.load %arg2[%c1, %c0_8, %c0_9] : memref<3x4x32xbf16, #tpu.memory_space<vmem>>, vector<1x4x32xbf16>
    %29 = vector.shape_cast %28 : vector<1x4x32xbf16> to vector<4x32xbf16>
    %c2 = arith.constant 2 : index
    %c0_10 = arith.constant 0 : index
    %c0_11 = arith.constant 0 : index
    %30 = vector.load %arg2[%c2, %c0_10, %c0_11] : memref<3x4x32xbf16, #tpu.memory_space<vmem>>, vector<1x4x32xbf16>
    %31 = vector.shape_cast %30 : vector<1x4x32xbf16> to vector<4x32xbf16>
    %c0_12 = arith.constant 0 : index
    %c0_13 = arith.constant 0 : index
    %c0_14 = arith.constant 0 : index
    %32 = vector.load %arg3[%c0_12, %c0_13, %c0_14] : memref<3x4x32xbf16, #tpu.memory_space<vmem>>, vector<1x4x32xbf16>
    %33 = vector.shape_cast %32 : vector<1x4x32xbf16> to vector<4x32xbf16>
    %c1_15 = arith.constant 1 : index
    %c0_16 = arith.constant 0 : index
    %c0_17 = arith.constant 0 : index
    %34 = vector.load %arg3[%c1_15, %c0_16, %c0_17] : memref<3x4x32xbf16, #tpu.memory_space<vmem>>, vector<1x4x32xbf16>
    %35 = vector.shape_cast %34 : vector<1x4x32xbf16> to vector<4x32xbf16>
    %c2_18 = arith.constant 2 : index
    %c0_19 = arith.constant 0 : index
    %c0_20 = arith.constant 0 : index
    %36 = vector.load %arg3[%c2_18, %c0_19, %c0_20] : memref<3x4x32xbf16, #tpu.memory_space<vmem>>, vector<1x4x32xbf16>
    %37 = vector.shape_cast %36 : vector<1x4x32xbf16> to vector<4x32xbf16>
    %c0_21 = arith.constant 0 : index
    %c0_22 = arith.constant 0 : index
    %38 = vector.load %arg4[%c0_21, %c0_22] : memref<32x32xbf16, #tpu.memory_space<vmem>>, vector<32x32xbf16>
    %cst = arith.constant 1.000000e+00 : bf16
    %39 = vector.broadcast %cst : bf16 to vector<1x256xbf16>
    %c0_23 = arith.constant 0 : index
    %c0_24 = arith.constant 0 : index
    %c0_25 = arith.constant 0 : index
    %40 = vector.load %arg1[%c0_23, %c0_24, %c0_25] : memref<1x32x256xf32, #tpu.memory_space<vmem>>, vector<1x32x256xf32>
    %41 = vector.shape_cast %40 : vector<1x32x256xf32> to vector<32x256xf32>
    %42 = arith.truncf %41 : vector<32x256xf32> to vector<32x256xbf16>
    %cst_26 = arith.constant dense<0.000000e+00> : vector<4x256xf32>
    %43 = tpu.matmul %27, %42, %cst_26 {dimension_numbers = #tpu.dot_dimension_numbers<[1], [0], [0], [1], [0, 0, 1, 1], [], []>} : vector<4x32xbf16>, vector<32x256xbf16>, vector<4x256xf32> -> vector<4x256xf32>
    %cst_27 = arith.constant dense<0.000000e+00> : vector<4x256xf32>
    %44 = tpu.matmul %29, %42, %cst_27 {dimension_numbers = #tpu.dot_dimension_numbers<[1], [0], [0], [1], [0, 0, 1, 1], [], []>} : vector<4x32xbf16>, vector<32x256xbf16>, vector<4x256xf32> -> vector<4x256xf32>
    %cst_28 = arith.constant dense<0.000000e+00> : vector<4x256xf32>
    %45 = tpu.matmul %31, %42, %cst_28 {dimension_numbers = #tpu.dot_dimension_numbers<[1], [0], [0], [1], [0, 0, 1, 1], [], []>} : vector<4x32xbf16>, vector<32x256xbf16>, vector<4x256xf32> -> vector<4x256xf32>
    %c1_i32_29 = arith.constant 1 : i32
    %46 = tpu.dynamic_rotate %43 by %c1_i32_29 dim 1 : vector<4x256xf32>, i32 -> vector<4x256xf32>
    %cst_30 = arith.constant 0.000000e+00 : f32
    %47 = vector.shape_cast %19 : vector<1x256xi1> to vector<1x256xi1>
    %48 = vector.broadcast %47 : vector<1x256xi1> to vector<4x256xi1>
    %49 = vector.broadcast %cst_30 : f32 to vector<4x256xf32>
    %50 = arith.select %48, %46, %49 : vector<4x256xi1>, vector<4x256xf32>
    %51 = arith.addf %44, %50 : vector<4x256xf32>
    %c255_i32 = arith.constant 255 : i32
    %52 = tpu.dynamic_rotate %45 by %c255_i32 dim 1 : vector<4x256xf32>, i32 -> vector<4x256xf32>
    %cst_31 = arith.constant 0.000000e+00 : f32
    %53 = vector.shape_cast %21 : vector<1x256xi1> to vector<1x256xi1>
    %54 = vector.broadcast %53 : vector<1x256xi1> to vector<4x256xi1>
    %55 = vector.broadcast %cst_31 : f32 to vector<4x256xf32>
    %56 = arith.select %54, %52, %55 : vector<4x256xi1>, vector<4x256xf32>
    %57 = arith.addf %51, %56 : vector<4x256xf32>
    %c0_32 = arith.constant 0 : index
    %c0_33 = arith.constant 0 : index
    %58 = vector.load %arg6[%c0_32, %c0_33] : memref<4x1xf32, #tpu.memory_space<vmem>>, vector<4x1xf32>
    %59 = vector.broadcast %58 : vector<4x1xf32> to vector<4x256xf32>
    %60 = arith.mulf %57, %59 : vector<4x256xf32>
    %c0_34 = arith.constant 0 : index
    %c0_35 = arith.constant 0 : index
    %61 = vector.load %arg7[%c0_34, %c0_35] : memref<4x1xf32, #tpu.memory_space<vmem>>, vector<4x1xf32>
    %62 = vector.broadcast %61 : vector<4x1xf32> to vector<4x256xf32>
    %63 = arith.addf %60, %62 : vector<4x256xf32>
    %cst_36 = arith.constant 0.000000e+00 : f32
    %64 = vector.broadcast %cst_36 : f32 to vector<4x256xf32>
    %65 = arith.maximumf %63, %64 : vector<4x256xf32>
    %cst_37 = arith.constant dense<0.000000e+00> : vector<4x256xf32>
    %66 = tpu.matmul %33, %42, %cst_37 {dimension_numbers = #tpu.dot_dimension_numbers<[1], [0], [0], [1], [0, 0, 1, 1], [], []>} : vector<4x32xbf16>, vector<32x256xbf16>, vector<4x256xf32> -> vector<4x256xf32>
    %cst_38 = arith.constant dense<0.000000e+00> : vector<4x256xf32>
    %67 = tpu.matmul %35, %42, %cst_38 {dimension_numbers = #tpu.dot_dimension_numbers<[1], [0], [0], [1], [0, 0, 1, 1], [], []>} : vector<4x32xbf16>, vector<32x256xbf16>, vector<4x256xf32> -> vector<4x256xf32>
    %cst_39 = arith.constant dense<0.000000e+00> : vector<4x256xf32>
    %68 = tpu.matmul %37, %42, %cst_39 {dimension_numbers = #tpu.dot_dimension_numbers<[1], [0], [0], [1], [0, 0, 1, 1], [], []>} : vector<4x32xbf16>, vector<32x256xbf16>, vector<4x256xf32> -> vector<4x256xf32>
    %c16_i32_40 = arith.constant 16 : i32
    %69 = tpu.dynamic_rotate %66 by %c16_i32_40 dim 1 : vector<4x256xf32>, i32 -> vector<4x256xf32>
    %cst_41 = arith.constant 0.000000e+00 : f32
    %70 = vector.shape_cast %23 : vector<1x256xi1> to vector<1x256xi1>
    %71 = vector.broadcast %70 : vector<1x256xi1> to vector<4x256xi1>
    %72 = vector.broadcast %cst_41 : f32 to vector<4x256xf32>
    %73 = arith.select %71, %69, %72 : vector<4x256xi1>, vector<4x256xf32>
    %74 = arith.addf %67, %73 : vector<4x256xf32>
    %c240_i32_42 = arith.constant 240 : i32
    %75 = tpu.dynamic_rotate %68 by %c240_i32_42 dim 1 : vector<4x256xf32>, i32 -> vector<4x256xf32>
    %cst_43 = arith.constant 0.000000e+00 : f32
    %76 = vector.shape_cast %25 : vector<1x256xi1> to vector<1x256xi1>
    %77 = vector.broadcast %76 : vector<1x256xi1> to vector<4x256xi1>
    %78 = vector.broadcast %cst_43 : f32 to vector<4x256xf32>
    %79 = arith.select %77, %75, %78 : vector<4x256xi1>, vector<4x256xf32>
    %80 = arith.addf %74, %79 : vector<4x256xf32>
    %c0_44 = arith.constant 0 : index
    %c0_45 = arith.constant 0 : index
    %81 = vector.load %arg8[%c0_44, %c0_45] : memref<4x1xf32, #tpu.memory_space<vmem>>, vector<4x1xf32>
    %82 = vector.broadcast %81 : vector<4x1xf32> to vector<4x256xf32>
    %83 = arith.mulf %80, %82 : vector<4x256xf32>
    %c0_46 = arith.constant 0 : index
    %c0_47 = arith.constant 0 : index
    %84 = vector.load %arg9[%c0_46, %c0_47] : memref<4x1xf32, #tpu.memory_space<vmem>>, vector<4x1xf32>
    %85 = vector.broadcast %84 : vector<4x1xf32> to vector<4x256xf32>
    %86 = arith.addf %83, %85 : vector<4x256xf32>
    %cst_48 = arith.constant 0.000000e+00 : f32
    %87 = vector.broadcast %cst_48 : f32 to vector<4x256xf32>
    %88 = arith.maximumf %86, %87 : vector<4x256xf32>
    %cst_49 = arith.constant dense<0.000000e+00> : vector<32x256xf32>
    %89 = tpu.matmul %38, %42, %cst_49 {dimension_numbers = #tpu.dot_dimension_numbers<[1], [0], [0], [1], [0, 0, 1, 1], [], []>} : vector<32x32xbf16>, vector<32x256xbf16>, vector<32x256xf32> -> vector<32x256xf32>
    %c0_50 = arith.constant 0 : index
    %c0_51 = arith.constant 0 : index
    %90 = vector.load %arg5[%c0_50, %c0_51] : memref<32x1xf32, #tpu.memory_space<vmem>>, vector<32x1xf32>
    %91 = vector.broadcast %90 : vector<32x1xf32> to vector<32x256xf32>
    %92 = arith.addf %89, %91 : vector<32x256xf32>
    %93 = arith.truncf %65 : vector<4x256xf32> to vector<4x256xbf16>
    %94 = arith.truncf %88 : vector<4x256xf32> to vector<4x256xbf16>
    %cst_52 = arith.constant dense<0.000000e+00> : vector<256x256xf32>
    %95 = tpu.matmul %93, %94, %cst_52 {dimension_numbers = #tpu.dot_dimension_numbers<[0], [0], [1], [1], [0, 1, 1, 1], [], []>} : vector<4x256xbf16>, vector<4x256xbf16>, vector<256x256xf32> -> vector<256x256xf32>
    %cst_53 = arith.constant dense<0xFF800000> : vector<256xf32>
    %96 = vector.multi_reduction <maximumf>, %95, %cst_53 [1] : vector<256x256xf32> to vector<256xf32>
    %97 = vector.shape_cast %96 : vector<256xf32> to vector<256x1xf32>
    %98 = vector.broadcast %97 : vector<256x1xf32> to vector<256x256xf32>
    %99 = arith.subf %95, %98 : vector<256x256xf32>
    %100 = math.exp %99 : vector<256x256xf32>
    %101 = arith.truncf %100 : vector<256x256xf32> to vector<256x256xbf16>
    %102 = arith.truncf %92 : vector<32x256xf32> to vector<32x256xbf16>
    %cst_54 = arith.constant dense<0.000000e+00> : vector<32x256xf32>
    %103 = tpu.matmul %102, %101, %cst_54 {dimension_numbers = #tpu.dot_dimension_numbers<[1], [1], [0], [0], [0, 0, 1, 0], [], []>} : vector<32x256xbf16>, vector<256x256xbf16>, vector<32x256xf32> -> vector<32x256xf32>
    %cst_55 = arith.constant dense<0.000000e+00> : vector<1x256xf32>
    %104 = tpu.matmul %39, %101, %cst_55 {dimension_numbers = #tpu.dot_dimension_numbers<[1], [1], [0], [0], [0, 0, 1, 0], [], []>} : vector<1x256xbf16>, vector<256x256xbf16>, vector<1x256xf32> -> vector<1x256xf32>
    %105 = tpu.reciprocal %104 {approx = true} : vector<1x256xf32> -> vector<1x256xf32>
    %106 = vector.broadcast %105 : vector<1x256xf32> to vector<32x256xf32>
    %107 = arith.mulf %103, %106 : vector<32x256xf32>
    %108 = vector.broadcast %0 : f32 to vector<32x256xf32>
    %109 = arith.mulf %108, %107 : vector<32x256xf32>
    %110 = arith.addf %109, %41 : vector<32x256xf32>
    %c0_56 = arith.constant 0 : index
    %c0_57 = arith.constant 0 : index
    %c0_58 = arith.constant 0 : index
    %111 = vector.load %arg11[%c0_56, %c0_57, %c0_58] : memref<1x32x256xf32, #tpu.memory_space<vmem>>, vector<1x32x256xf32>
    %112 = vector.shape_cast %111 : vector<1x32x256xf32> to vector<32x256xf32>
    %113 = vector.shape_cast %110 : vector<32x256xf32> to vector<1x32x256xf32>
    tpu.vector_store %arg11[%c0_56, %c0_57, %c0_58], %113 {strides = array<i32>} : memref<1x32x256xf32, #tpu.memory_space<vmem>>, vector<1x32x256xf32>,
    return
  }
  func.func @transform_0(%arg0: i32) -> (i32, i32, i32) {
    %c0_i32 = arith.constant 0 : i32
    %c0_i32_0 = arith.constant 0 : i32
    %c0_i32_1 = arith.constant 0 : i32
    return %arg0, %c0_i32, %c0_i32_0 : i32, i32, i32
  }
  func.func @transform_1(%arg0: i32) -> (i32, i32, i32) {
    %c0_i32 = arith.constant 0 : i32
    %c0_i32_0 = arith.constant 0 : i32
    %c0_i32_1 = arith.constant 0 : i32
    %c0_i32_2 = arith.constant 0 : i32
    return %c0_i32, %c0_i32_0, %c0_i32_1 : i32, i32, i32
  }
  func.func @transform_2(%arg0: i32) -> (i32, i32, i32) {
    %c0_i32 = arith.constant 0 : i32
    %c0_i32_0 = arith.constant 0 : i32
    %c0_i32_1 = arith.constant 0 : i32
    %c0_i32_2 = arith.constant 0 : i32
    return %c0_i32, %c0_i32_0, %c0_i32_1 : i32, i32, i32
  }
  func.func @transform_3(%arg0: i32) -> (i32, i32) {
    %c0_i32 = arith.constant 0 : i32
    %c0_i32_0 = arith.constant 0 : i32
    %c0_i32_1 = arith.constant 0 : i32
    return %c0_i32, %c0_i32_0 : i32, i32
  }
  func.func @transform_4(%arg0: i32) -> (i32, i32) {
    %c0_i32 = arith.constant 0 : i32
    %c0_i32_0 = arith.constant 0 : i32
    %c0_i32_1 = arith.constant 0 : i32
    return %c0_i32, %c0_i32_0 : i32, i32
  }
  func.func @transform_5(%arg0: i32) -> (i32, i32) {
    %c0_i32 = arith.constant 0 : i32
    %c0_i32_0 = arith.constant 0 : i32
    %c0_i32_1 = arith.constant 0 : i32
    return %c0_i32, %c0_i32_0 : i32, i32
  }
  func.func @transform_6(%arg0: i32) -> (i32, i32) {
    %c0_i32 = arith.constant 0 : i32
    %c0_i32_0 = arith.constant 0 : i32
    %c0_i32_1 = arith.constant 0 : i32
    return %c0_i32, %c0_i32_0 : i32, i32
  }
  func.func @transform_7(%arg0: i32) -> (i32, i32) {
    %c0_i32 = arith.constant 0 : i32
    %c0_i32_0 = arith.constant 0 : i32
    %c0_i32_1 = arith.constant 0 : i32
    return %c0_i32, %c0_i32_0 : i32, i32
  }
  func.func @transform_8(%arg0: i32) -> (i32, i32) {
    %c0_i32 = arith.constant 0 : i32
    %c0_i32_0 = arith.constant 0 : i32
    %c0_i32_1 = arith.constant 0 : i32
    return %c0_i32, %c0_i32_0 : i32, i32
  }
  func.func @transform_9(%arg0: i32) -> i32 {
    %c0_i32 = arith.constant 0 : i32
    %c0_i32_0 = arith.constant 0 : i32
    return %c0_i32 : i32
  }
  func.func @transform_10(%arg0: i32) -> (i32, i32, i32) {
    %c0_i32 = arith.constant 0 : i32
    %c0_i32_0 = arith.constant 0 : i32
    %c0_i32_1 = arith.constant 0 : i32
    return %arg0, %c0_i32, %c0_i32_0 : i32, i32, i32
  }
}

</mosaic_0001>

<bundles_post_ra>
// kernel: tpu_custom_call.1
= control target key start
LH: loop header
LB: loop body
LE: loop exit
PB: predicated region body
PF: predicated region fallthrough
CT: control target
= control target key end

     0   :  { %s2737_s0 = inlined_call_operand.hbm [shape: f32[2,32,256], index: 0, kind: input, shape index: {}]   ;;  %s2738_s1 = inlined_call_operand.vmem [shape: bf16[3,4,32], index: 1, kind: input, shape index: {}]   ;;  %s2739_s2 = inlined_call_operand.vmem [shape: bf16[3,4,32], index: 2, kind: input, shape index: {}]   ;;  %s2740_s3 = inlined_call_operand.vmem [shape: bf16[32,32], index: 3, kind: input, shape index: {}]   ;;  %s2741_s4 = inlined_call_operand.vmem [shape: f32[32,1], index: 4, kind: input, shape index: {}]   ;;  %s2742_s5 = inlined_call_operand.vmem [shape: f32[4,1], index: 5, kind: input, shape index: {}]   ;;  %s2743_s6 = inlined_call_operand.vmem [shape: f32[4,1], index: 6, kind: input, shape index: {}]   ;;  %s2744_s7 = inlined_call_operand.vmem [shape: f32[4,1], index: 7, kind: input, shape index: {}]   ;;  %s2745_s8 = inlined_call_operand.vmem [shape: f32[4,1], index: 8, kind: input, shape index: {}]   ;;  %s2746_s9 = inlined_call_operand.<no memory space> [shape: f32[1], index: 9, kind: input, shape index: {}]   ;;  %s2747_s10 = inlined_call_operand.hbm [shape: f32[2,32,256], index: 10, kind: output, shape index: {}]  }
   0x1   :  { %15 = sst [smem:[#allocation2]] %s2746_s9 }
   0x2   :  { %16 = vsyncpa [#allocation4], 0 }
   0x3   :  { %18 = vsyncpa [#allocation4 + $0x1], 0 }
   0x4   :  { %19 = vsyncpa [#allocation5], 0 }
   0x5   :  { %21 = vsyncpa [#allocation5 + $0x1], 0  ;;  %s2071_s15 = smov 0   ;;  %s2073_s16 = smov 0  }
   0x6   :  { %s2075_s17 = smov 0   ;;  %s2077_s18 = smov 0  }
   0x7 LB: > { %2756 = sst [smem:[#allocation9_spill]] %s1998_s17  ;;  %s2092_s9 = sadd.s32 4294967295, %s2002_s18   ;;  %s2002_s18 = sphi %s2077_s18, %s2775_s18   ;;  %s1998_s17 = sphi %s2075_s17, %s2777_s17   ;;  %s1994_s16 = sphi %s2073_s16, %s2779_s16   ;;  %s1990_s15 = sphi %s2071_s15, %s2778_s15  }
   0x8   : > { %s1630_s19 = sadd.s32 4294967294, %s2002_s18   ;;  %s2096_s20 = sadd.s32 1, %s2002_s18  }
   0x9   : > { %2757 = sst [smem:[#allocation10_spill]] %s2096_s20  ;;  %s34_s21 = sadd.s32 1, %s1998_s17 }
   0xa   : > { %s31_s22 = ssub.s32 %s2002_s18, %s2096_s20  ;;  %p41_p0 = scmp.ne.s32.totalorder %s1998_s17, %s1994_s16 }
   0xb   : > { %p32_p1 = scmp.eq.s32.totalorder %s31_s22, 0  ;;  %p42_p2 = scmp.eq.s32.totalorder %s2002_s18, 0 }
   0xc   : > { %p47_p3 = scmp.ne.s32.totalorder %s1994_s16, %s1990_s15  ;;  %p48_p4 = scmp.eq.s32.totalorder %s2092_s9, 0 }
   0xd   : > { %s2108_s23 = scalar_select %p32_p1, %s1998_s17, %s34_s21  }
   0xe   : > { %p2110_p5 = por %p42_p2, %p41_p0  ;;  %p2114_p6 = por %p48_p4, %p47_p3 }
   0xf   : > { %2758 = sst [smem:[#allocation11_spill]] %s2108_s23  ;;  %p260_p7 = scmp.eq.s32.totalorder %s2092_s9, 1 }
  0x10   : > { %p266_p8 = scmp.eq.s32.totalorder %s1630_s19, 1  ;;  %p1720_p10 = scmp.lt.s32.totalorder %s2002_s18, 2 }
  0x11   : > { %p2121_p11 = por %p260_p7, %p41_p0  ;;  %s313_s28 = sand.u32 1, %s1998_s17  }
  0x12   : > { %p2125_p12 = por %p266_p8, %p47_p3  ;;  %s1704_s29 = sshll.u32 %s2002_s18, 6 }
  0x13   : > { %s1633_s30 = sshll.u32 %s313_s28, 6  ;;  %s322_s13 = scalar_lea.hbm %s2737_s0, %s1704_s29 }
  0x14   : > { %s323_s14 = sshll.u32 %s322_s13, 4  ;;  %s317_s19 = scalar_lea.vmem [#allocation3], %s1633_s30  ;;  %s324_s14 = int_to_ptr.hbm [resolvable:$true] %s323_s14 }
  0x15   : > { %s325_s21 = sshll.u32 %s317_s19, 4  ;;  %p2136_p13 = pnand %p1720_p10, %p2110_p5  ;;  %s326_s21 = int_to_ptr.vmem [resolvable:$true] %s325_s21 }
  0x16   : > { %p1636_p0 = scmp.ge.s32.totalorder %s2002_s18, 1  ;;  %p333_p1 = scmp.lt.s32.totalorder %s2002_s18, 3 }
  0x17   : > { %s314_s23 = scalar_lea.sflag [#allocation4], %s313_s28  ;;  %s1906_s17 = sshra.s32 %s324_s14, 4  ;;  %s1907_s17 = int_to_ptr.hbm [resolvable:$true] %s1906_s17 }
  0x18   : > { %s1908_s20 = scalar_lea.hbm %s1907_s17, 64  ;;  %p1910_p3 = pneg %p2136_p13 }
  0x19   : > { %p1909_p2 = scmp.ne.s32.totalorder %s1907_s17, %s1908_s20  ;;  %s1913_s24 = scalar_lea.hbm %s2737_s0, 128 }
  0x1a   : > { %p1914_p5 = scmp.lt.s32.totalorder %s1907_s17, %s2737_s0  ;;  %p1915_p8 = scmp.lt.s32.totalorder %s1913_s24, %s1908_s20 }
  0x1b   : > { %p1911_p4 = pnand %p1910_p3, %p1909_p2 }
  0x1c   : > { %p1916_p10 = por %p1915_p8, %p1914_p5 }
  0x1d   : > { %p1912_p7 = pneg %p1911_p4 }
  0x1f   : > { %p1917_p9 = pnand %p1916_p10, %p1912_p7 }
  0x21   : > { %1920 = shalt.err (!%p1917_p9)
}
  0x22   : > { %s2004_s28 = smov 256   ;;  %s2005_s13 = smov 16  }
  0x23   : > { %1715 = dma.hbm_to_vmem [thread:$0]  (!%p2136_p13), %s324_s14, 1024, %s326_s21, %s314_s23, %s2004_s28, %s2004_s28, %s2005_s13  }
  0x24   : > { %p334_p2 = pnand %p1636_p0, %p333_p1 }
  0x26   : > { %337 = sbr.rel (%p334_p2) target bundleno = 1367 (0x557), region = 60 }
  0x2b   : > { %s2157_s19 = sand.u32 1, %s1994_s16  }
  0x2c   : > { %s1637_s17 = sshll.u32 %s2157_s19, 6  ;;  %s340_s20 = scalar_lea.sflag [#allocation4], %s2157_s19 }
  0x2d   : > { %s2163_s29 = scalar_lea.vmem [#allocation3], %s1637_s17 }
  0x2e   : > { %1981 = dma.done.wait (%p2114_p6), %s340_s20, 1024  }
  0x2f   : > { %1983 = vsyncadd (%p2114_p6), %s340_s20, 4294966272  ;;  %v437_v0 = vld [vmem:[%s2163_s29 + $0x20] sm:$0xff]  ;;  %v439_v1 = vld [vmem:[%s2163_s29 + $0x30] sm:$0xff]  ;;  %vm445_vm0 = vcmask 261120   ;;  %v2006_v18 = vmov 0   ;;  %s2007_s22 = smov 1   ;;  %v384_v43 = vlaneseq }
  0x30   : > { %v438_v2 = vld [vmem:[%s2163_s29 + $0x28] sm:$0xff]  ;;  %v443_v3 = vpack.c.bf16 %v439_v1, %v437_v0  ;;  %v440_v4 = vld [vmem:[%s2163_s29 + $0x38] sm:$0xff]  ;;  %v433_v5 = vld [vmem:[%s2163_s29] sm:$0xff]  ;;  %1763 = vset.pattern.permute.xlu2 %v2006_v18  ;;  %1764 = vset.pattern.permute.xlu1 %v2006_v18  ;;  %s2008_s30 = smov 127   ;;  %s2009_s24 = smov 16   ;;  %vm867_vm11 = vcmask 1041408  }
  0x31   : > { %v435_v6 = vld [vmem:[%s2163_s29 + $0x10] sm:$0xff]  ;;  %v444_v7 = vpack.c.bf16 %v440_v4, %v438_v2  ;;  %v434_v8 = vld [vmem:[%s2163_s29 + $0x8] sm:$0xff]  ;;  %v436_v9 = vld [vmem:[%s2163_s29 + $0x18] sm:$0xff]  ;;  %s2010_s28 = smov 112   ;;  %v385_v44 = vand.u32 127, %v384_v43  ;;  %vm818_vm12 = vcmask 31744  }
  0x32   : > { %455 = vmatpush.bf16.msra.mxu0 %v443_v3  ;;  %484 = vmatpush.bf16.msra.mxu2 %v443_v3  ;;  %v441_v10 = vpack.c.bf16 %v435_v6, %v433_v5  ;;  %v442_v11 = vpack.c.bf16 %v436_v9, %v434_v8  ;;  %v419_v12 = vld [vmem:[%s2738_s1] sm:$0x3]  ;;  %v1640_v13 = vld [vmem:[%s2738_s1 + $0x4] sm:$0x3]  ;;  %v1639_v14 = vld [vmem:[%s2738_s1 + $0x2] sm:$0x3] }
  0x33   : > { %468 = vmatpush.bf16.msra.mxu1 %v444_v7  ;;  %497 = vmatpush.bf16.msra.mxu3 %v444_v7  ;;  %v424_v15 = vld [vmem:[%s2739_s2] sm:$0x3]  ;;  %v1642_v16 = vld [vmem:[%s2739_s2 + $0x4] sm:$0x3]  ;;  %v1641_v17 = vld [vmem:[%s2739_s2 + $0x2] sm:$0x3] }
  0x34   : > { %v561_v19 = vld [vmem:[%s2742_s5] sm:$0xf]  ;;  %v386_v46 = vadd.s32 128, %v385_v44  ;;  %v391_v49 = vand.u32 15, %v385_v44  ;;  %vm508_vm1 = vcmp.lt.s32.totalorder %v385_v44, 1  ;;  %vm550_vm4 = vcmp.lt.s32.totalorder %v385_v44, 127 }
  0x35   : > { %564 = vperm.xlu2 %1763, %v561_v19   ;;  %v569_v20 = vld [vmem:[%s2743_s6] sm:$0xf]  ;;  %vm641_vm7 = vcmp.lt.s32.totalorder %v385_v44, 16  ;;  %vm415_vm8 = vcmp.ge.s32.totalorder %v385_v44, 16  ;;  %vm683_vm9 = vcmp.lt.s32.totalorder %v385_v44, 112  ;;  %s383_s25 = sld [smem:[#allocation2]] }
  0x36   : > { %456 = vmatpush.bf16.msra.mxu0 %v441_v10  ;;  %485 = vmatpush.bf16.msra.mxu2 %v441_v10  ;;  %v694_v35 = vld [vmem:[%s2744_s7] sm:$0xf]  ;;  %v398_v50 = vand.u32 15, %v386_v46  ;;  %vm411_vm2 = vcmp.ne.s32.totalorder %v391_v49, 0  ;;  %vm413_vm5 = vcmp.ne.s32.totalorder %v391_v49, 15  ;;  %vm418_vm10 = vcmp.lt.s32.totalorder %v386_v46, 240 }
  0x37   : > { %469 = vmatpush.bf16.msra.mxu1 %v442_v11  ;;  %498 = vmatpush.bf16.msra.mxu3 %v442_v11  ;;  %v702_v40 = vld [vmem:[%s2745_s8] sm:$0xf]  ;;  %s2688_s14 = scalar_lea.vmem [#allocation6], %s1637_s17  ;;  %s1707_s17 = sshll.u32 %s2092_s9, 6 }
  0x38   : > { %vm412_vm3 = vcmp.ne.s32.totalorder %v398_v50, 0  ;;  %vm414_vm6 = vcmp.ne.s32.totalorder %v398_v50, 15  ;;  %s1554_s11 = sshll.u32 %s2688_s14, 4  ;;  %s1542_s12 = scalar_lea.sflag [#allocation5], %s2157_s19  ;;  %s1555_s11 = int_to_ptr.vmem [resolvable:$true] %s1554_s11 }
  0x39   : > { %1643 = vmatmul.msk.bf16.vlgmr.msra.gmra.mxu0 %vm445_vm0, %v419_v12  ;;  %1645 = vmatmul.msk.bf16.vlgmr.msra.gmra.mxu2 %vm445_vm0, %v1640_v13 }
  0x3a   : > { %526 = vmatpush.bf16.msrb.mxu0 %v443_v3  ;;  %1644 = vmatmul.msk.bf16.vlgmr.msra.gmra.mxu1 %vm445_vm0, %v419_v12 }
  0x3b   : > { %539 = vmatpush.bf16.msrb.mxu1 %v444_v7  ;;  %1646 = vmatmul.msk.bf16.vlgmr.msra.gmra.mxu3 %vm445_vm0, %v1640_v13 }
  0x3c   : > { %588 = vmatpush.bf16.msrb.mxu2 %v443_v3  ;;  %601 = vmatpush.bf16.msrb.mxu3 %v444_v7 }
  0x3d   : > { %572 = vperm.xlu2 %1763, %v569_v20  }
  0x3e   : > { %527 = vmatpush.bf16.msrb.mxu0 %v441_v10 }
  0x3f   : > { %540 = vmatpush.bf16.msrb.mxu1 %v442_v11 }
  0x40   : > { %589 = vmatpush.bf16.msrb.mxu2 %v441_v10  ;;  %602 = vmatpush.bf16.msrb.mxu3 %v442_v11 }
  0x42   : > { %617 = vmatpush.bf16.msra.mxu0 %v443_v3 }
  0x43   : > { %630 = vmatpush.bf16.msra.mxu1 %v444_v7 }
  0x44   : > { %659 = vmatpush.bf16.msra.mxu2 %v443_v3  ;;  %672 = vmatpush.bf16.msra.mxu3 %v444_v7 }
  0x46   : > { %618 = vmatpush.bf16.msra.mxu0 %v441_v10 }
  0x47   : > { %631 = vmatpush.bf16.msra.mxu1 %v442_v11 }
  0x48   : > { %660 = vmatpush.bf16.msra.mxu2 %v441_v10  ;;  %673 = vmatpush.bf16.msra.mxu3 %v442_v11 }
  0x49   : > { %1647 = vmatmul.msk.bf16.vlgmr.msrb.gmra.mxu0 %vm445_vm0, %v1639_v14  ;;  %1649 = vmatmul.msk.bf16.vlgmr.msrb.gmra.mxu2 %vm445_vm0, %v424_v15 }
  0x4a   : > { %1648 = vmatmul.msk.bf16.vlgmr.msrb.gmra.mxu1 %vm445_vm0, %v1639_v14  ;;  %758 = vmatpush.bf16.msrb.mxu0 %v443_v3 }
  0x4b   : > { %1650 = vmatmul.msk.bf16.vlgmr.msrb.gmra.mxu3 %vm445_vm0, %v424_v15  ;;  %777 = vmatpush.bf16.msrb.mxu1 %v444_v7 }
  0x4e   : > { %759 = vmatpush.bf16.msrb.mxu0 %v441_v10 }
  0x4f   : > { %778 = vmatpush.bf16.msrb.mxu1 %v442_v11 }
  0x59   : > { %1651 = vmatmul.msk.bf16.vlgmr.msra.gmra.mxu0 %vm445_vm0, %v1642_v16  ;;  %1653 = vmatmul.msk.bf16.vlgmr.msra.gmra.mxu2 %vm445_vm0, %v1641_v17 }
  0x5a   : > { %1652 = vmatmul.msk.bf16.vlgmr.msra.gmra.mxu1 %vm445_vm0, %v1642_v16 }
  0x5b   : > { %1654 = vmatmul.msk.bf16.vlgmr.msra.gmra.mxu3 %vm445_vm0, %v1641_v17 }
  0x8f   : > { %v565_v52 = vpop.permute.xlu2 %564 }
  0x97   : > { %v573_v5 = vpop.permute.xlu2 %572 }
  0xb6   : > { %v458_v21 = vpop.f32.mrf.mxu0 }
  0xb7   : > { %v471_v22 = vpop.f32.mrf.mxu1  ;;  %504 = vrot.lane.b32.xlu0 %v458_v21, %s2007_s22 }
  0xbc   : > { %v487_v23 = vpop.f32.mrf.mxu2 }
  0xbd   : > { %546 = vrot.lane.b32.xlu1 %v487_v23, %s2008_s30 }
  0xbe   : > { %v500_v24 = vpop.f32.mrf.mxu3  ;;  %v460_v25 = vpop.f32.mrf.mxu0 }
  0xbf   : > { %v473_v26 = vpop.f32.mrf.mxu1  ;;  %506 = vrot.lane.b32.xlu0 %v471_v22, %s2007_s22 }
  0xc4   : > { %v489_v27 = vpop.f32.mrf.mxu2 }
  0xc5   : > { %548 = vrot.lane.b32.xlu1 %v500_v24, %s2008_s30  ;;  %s1553_s30 = scalar_lea.hbm %s2747_s10, %s1707_s17 }
  0xc6   : > { %v502_v28 = vpop.f32.mrf.mxu3  ;;  %v529_v29 = vpop.f32.mrf.mxu0  ;;  %s1556_s9 = sshll.u32 %s1553_s30, 4  ;;  %s1557_s9 = int_to_ptr.hbm [resolvable:$true] %s1556_s9 }
  0xc7   : > { %v542_v30 = vpop.f32.mrf.mxu1 }
  0xcc   : > { %v591_v31 = vpop.f32.mrf.mxu2 }
  0xcd   : > { %637 = vrot.lane.b32.xlu0 %v591_v31, %s2009_s24 }
  0xce   : > { %v604_v32 = vpop.f32.mrf.mxu3  ;;  %v531_v33 = vpop.f32.mrf.mxu0 }
  0xcf   : > { %639 = vrot.lane.b32.xlu1 %v604_v32, %s2009_s24  ;;  %v544_v34 = vpop.f32.mrf.mxu1 }
  0xd4   : > { %v593_v36 = vpop.f32.mrf.mxu2 }
  0xd6   : > { %v606_v37 = vpop.f32.mrf.mxu3  ;;  %v620_v38 = vpop.f32.mrf.mxu0 }
  0xd7   : > { %697 = vperm.xlu1 %1764, %v694_v35   ;;  %v633_v39 = vpop.f32.mrf.mxu1  ;;  %679 = vrot.lane.b32.xlu2 %v620_v38, %s2010_s28 }
  0xd8   : > { %681 = vrot.lane.b32.xlu0 %v633_v39, %s2010_s28  ;;  %s1950_s28 = sshra.s32 %s1557_s9, 4  ;;  %s1951_s28 = int_to_ptr.hbm [resolvable:$true] %s1950_s28 }
  0xd9   : > { %s1952_s13 = scalar_lea.hbm %s1951_s28, 64  ;;  %p1957_p0 = scmp.lt.s32.totalorder %s1951_s28, %s2747_s10 }
  0xda   : > { %p1953_p6 = scmp.ne.s32.totalorder %s1951_s28, %s1952_s13 }
  0xdc   : > { %v662_v47 = vpop.f32.mrf.mxu2  ;;  %p1954_p9 = pnand %p1953_p6, %p2121_p11 }
  0xde   : > { %v622_v41 = vpop.f32.mrf.mxu0  ;;  %v675_v48 = vpop.f32.mrf.mxu3  ;;  %p1955_p13 = pneg %p1954_p9 }
  0xdf   : > { %705 = vperm.xlu2 %1763, %v702_v40   ;;  %v635_v42 = vpop.f32.mrf.mxu1 }
  0xe4   : > { %v664_v56 = vpop.f32.mrf.mxu2 }
  0xe6   : > { %v677_v57 = vpop.f32.mrf.mxu3 }
 0x129   : > { %v505_v45 = vpop.permute.xlu0 %504 }
 0x12f   : > { %v547_v51 = vpop.permute.xlu1 %546 }
 0x131   : > { %v507_v53 = vpop.permute.xlu0 %506  ;;  %v680_v17 = vpop.permute.xlu2 %679 }
 0x132   : > { %v509_v54 = vsel %vm508_vm1, %v505_v45, %v507_v53  ;;  %v510_v55 = vsel %vm508_vm1, %v507_v53, %v505_v45 }
 0x133   : > { %v515_v58 = vsel %vm411_vm2, %v510_v55, 0.0  ;;  %v516_v59 = vsel %vm412_vm3, %v509_v54, 0.0 }
 0x134   : > { %v530_v61 = vadd.f32 %v529_v29, %v515_v58  ;;  %v543_v62 = vadd.f32 %v542_v30, %v516_v59 }
 0x137   : > { %v549_v60 = vpop.permute.xlu1 %548 }
 0x138   : > { %v551_v63 = vsel %vm550_vm4, %v547_v51, %v549_v60  ;;  %v552_v0 = vsel %vm550_vm4, %v549_v60, %v547_v51 }
 0x139   : > { %v557_v1 = vsel %vm413_vm5, %v551_v63, 0.0  ;;  %v558_v2 = vsel %vm414_vm6, %v552_v0, 0.0  ;;  %v706_v31 = vpop.permute.xlu2 %705 }
 0x13a   : > { %v559_v3 = vadd.f32 %v557_v1, %v530_v61  ;;  %v560_v4 = vadd.f32 %v558_v2, %v543_v62 }
 0x13c   : > { %v567_v6 = vmul.f32 %v565_v52, %v559_v3  ;;  %v568_v7 = vmul.f32 %v565_v52, %v560_v4 }
 0x13e   : > { %v575_v8 = vadd.f32 %v573_v5, %v567_v6  ;;  %v576_v9 = vadd.f32 %v573_v5, %v568_v7 }
 0x13f   : > { %v638_v10 = vpop.permute.xlu0 %637 }
 0x140   : > { %v577_v11 = vmax.f32 %v575_v8, 0.0  ;;  %v578_v12 = vmax.f32 %v576_v9, 0.0 }
 0x141   : > { %v640_v13 = vpop.permute.xlu1 %639 }
 0x142   : > { %v643_v14 = vsel %vm641_vm7, %v640_v13, %v638_v10  ;;  %v790_v15 = vpack.c.bf16 %v577_v11, %v577_v11  ;;  %v791_v16 = vpack.c.bf16 %v578_v12, %v578_v12  ;;  %v642_v20 = vsel %vm641_vm7, %v638_v10, %v640_v13 }
 0x143   : > { %v648_v19 = vsel %vm415_vm8, %v643_v14, 0.0  ;;  %v676_v22 = vadd.f32 %v675_v48, %v642_v20 }
 0x144   : > { %794 = vxpose.binary.xlu0.c.b16.start.end [1/2] (short) %v791_v16, %v790_v15, 128  ;;  %v663_v21 = vadd.f32 %v662_v47, %v648_v19 }
 0x149   : > { %v698_v26 = vpop.permute.xlu1 %697 }
 0x14a   : > { %v682_v23 = vpop.permute.xlu0 %681 }
 0x14b   : > { %v684_v24 = vsel %vm683_vm9, %v680_v17, %v682_v23  ;;  %v685_v25 = vsel %vm683_vm9, %v682_v23, %v680_v17 }
 0x14c   : > { %v691_v27 = vsel %vm418_vm10, %v685_v25, 0.0  ;;  %v692_v28 = vadd.f32 %v684_v24, %v663_v21 }
 0x14d   : > { %v693_v29 = vadd.f32 %v691_v27, %v676_v22 }
 0x14e   : > { %v700_v30 = vmul.f32 %v698_v26, %v692_v28 }
 0x14f   : > { %v701_v32 = vmul.f32 %v698_v26, %v693_v29  ;;  %v1705_v26 = vld [vmem:[%s2740_s3] sm:$0xff] }
 0x150   : > { %v708_v33 = vadd.f32 %v706_v31, %v700_v30  ;;  %1663 = vmatmul.msk.bf16.vlgmr.msrb.gmra.mxu0 %vm445_vm0, %v1705_v26  ;;  %1665 = vmatmul.msk.bf16.vlgmr.msrb.gmra.mxu1 %vm445_vm0, %v1705_v26 }
 0x151   : > { %v709_v34 = vadd.f32 %v706_v31, %v701_v32 }
 0x152   : > { %v710_v35 = vmax.f32 %v708_v33, 0.0 }
 0x153   : > { %v711_v36 = vmax.f32 %v709_v34, 0.0 }
 0x154   : > { %v792_v37 = vpack.c.bf16 %v710_v35, %v710_v35 }
 0x155   : > { %v793_v38 = vpack.c.bf16 %v711_v36, %v711_v36 }
 0x156   : > { %v869_v39 = vsel %vm867_vm11, %v792_v37, 0 }
 0x157   : > { %881 = vmatpush.bf16.msrb.mxu2 %v869_v39  ;;  %v872_v40 = vsel %vm867_vm11, %v793_v38, 0 }
 0x158   : > { %970 = vmatpush.bf16.msrb.mxu3 %v872_v40 }
 0x1ab   : > { %1765 = vset.pattern.permute.xlu0 %v2006_v18 }
 0x1f0   : > { %v802_v41 = vpop.trf.xlu0 }
 0x1f1   : > { %1667 = vmatmul.msk.bf16.vlgmr.msrb.gmra.mxu2 %vm818_vm12, %v802_v41  ;;  %1683 = vmatmul.msk.bf16.vlgmr.msrb.gmra.mxu3 %vm818_vm12, %v802_v41 }
 0x1f8   : > { %v803_v42 = vpop.trf.xlu0 }
 0x200   : > { %v804_v43 = vpop.trf.xlu0 }
 0x201   : > { %1668 = vmatmul.msk.bf16.gmra.mxu2 %vm818_vm12, %v804_v43  ;;  %1684 = vmatmul.msk.bf16.gmra.mxu3 %vm818_vm12, %v804_v43 }
 0x208   : > { %v805_v44 = vpop.trf.xlu0 }
 0x210   : > { %v806_v45 = vpop.trf.xlu0 }
 0x211   : > { %1669 = vmatmul.msk.bf16.gmra.mxu2 %vm818_vm12, %v806_v45  ;;  %1685 = vmatmul.msk.bf16.gmra.mxu3 %vm818_vm12, %v806_v45 }
 0x218   : > { %v807_v46 = vpop.trf.xlu0 }
 0x220   : > { %v808_v18 = vpop.trf.xlu0 }
 0x221   : > { %1670 = vmatmul.msk.bf16.gmra.mxu2 %vm818_vm12, %v808_v18  ;;  %1686 = vmatmul.msk.bf16.gmra.mxu3 %vm818_vm12, %v808_v18  ;;  %v712_v18 = vld [vmem:[%s2741_s4] sm:$0xff] }
 0x228   : > { %v809_v47 = vpop.trf.xlu0 }
 0x230   : > { %v810_v48 = vpop.trf.xlu0 }
 0x231   : > { %1671 = vmatmul.msk.bf16.gmra.mxu2 %vm818_vm12, %v810_v48  ;;  %1687 = vmatmul.msk.bf16.gmra.mxu3 %vm818_vm12, %v810_v48 }
 0x238   : > { %v811_v49 = vpop.trf.xlu0 }
 0x240   : > { %v812_v50 = vpop.trf.xlu0 }
 0x241   : > { %1672 = vmatmul.msk.bf16.gmra.mxu2 %vm818_vm12, %v812_v50  ;;  %1688 = vmatmul.msk.bf16.gmra.mxu3 %vm818_vm12, %v812_v50 }
 0x248   : > { %v813_v51 = vpop.trf.xlu0 }
 0x250   : > { %v814_v52 = vpop.trf.xlu0 }
 0x251   : > { %1673 = vmatmul.msk.bf16.gmra.mxu2 %vm818_vm12, %v814_v52  ;;  %1689 = vmatmul.msk.bf16.gmra.mxu3 %vm818_vm12, %v814_v52 }
 0x258   : > { %v815_v53 = vpop.trf.xlu0 }
 0x260   : > { %v816_v54 = vpop.trf.xlu0 }
 0x261   : > { %1674 = vmatmul.msk.bf16.gmra.mxu2 %vm818_vm12, %v816_v54  ;;  %1690 = vmatmul.msk.bf16.gmra.mxu3 %vm818_vm12, %v816_v54 }
 0x268   : > { %v817_v29 = vpop.trf.xlu0 }
 0x271   : > { %1675 = vmatmul.msk.bf16.gmra.mxu2 %vm818_vm12, %v803_v42  ;;  %1691 = vmatmul.msk.bf16.gmra.mxu3 %vm818_vm12, %v803_v42 }
 0x274   : > { %v2242_v55 = vpop.f32.mrf.mxu2  ;;  %v2244_v56 = vpop.f32.mrf.mxu3 }
 0x275   : > { %v1052_v36 = vmax.f32 %v2242_v55, %v2244_v56 }
 0x27c   : > { %v2246_v57 = vpop.f32.mrf.mxu2  ;;  %v2248_v58 = vpop.f32.mrf.mxu3 }
 0x27d   : > { %v1055_v40 = vmax.f32 %v2246_v57, %v2248_v58 }
 0x281   : > { %1676 = vmatmul.msk.bf16.gmra.mxu2 %vm818_vm12, %v805_v44  ;;  %1692 = vmatmul.msk.bf16.gmra.mxu3 %vm818_vm12, %v805_v44 }
 0x284   : > { %v2252_v59 = vpop.f32.mrf.mxu2  ;;  %v2254_v60 = vpop.f32.mrf.mxu3 }
 0x285   : > { %v1058_v32 = vmax.f32 %v2252_v59, %v2254_v60 }
 0x28c   : > { %v2256_v61 = vpop.f32.mrf.mxu2  ;;  %v2258_v62 = vpop.f32.mrf.mxu3 }
 0x28d   : > { %v1061_v37 = vmax.f32 %v2256_v61, %v2258_v62 }
 0x291   : > { %1677 = vmatmul.msk.bf16.gmra.mxu2 %vm818_vm12, %v807_v46  ;;  %1693 = vmatmul.msk.bf16.gmra.mxu3 %vm818_vm12, %v807_v46 }
 0x294   : > { %v2262_v63 = vpop.f32.mrf.mxu2  ;;  %v2264_v0 = vpop.f32.mrf.mxu3 }
 0x295   : > { %v1064_v27 = vmax.f32 %v2262_v63, %v2264_v0 }
 0x29c   : > { %v2266_v1 = vpop.f32.mrf.mxu2  ;;  %v2268_v2 = vpop.f32.mrf.mxu3 }
 0x29d   : > { %v1067_v33 = vmax.f32 %v2266_v1, %v2268_v2 }
 0x2a1   : > { %1678 = vmatmul.msk.bf16.gmra.mxu2 %vm818_vm12, %v809_v47  ;;  %1694 = vmatmul.msk.bf16.gmra.mxu3 %vm818_vm12, %v809_v47 }
 0x2a4   : > { %v2272_v3 = vpop.f32.mrf.mxu2  ;;  %v2274_v4 = vpop.f32.mrf.mxu3 }
 0x2a5   : > { %v1070_v21 = vmax.f32 %v2272_v3, %v2274_v4 }
 0x2ac   : > { %v2276_v5 = vpop.f32.mrf.mxu2  ;;  %v2278_v6 = vpop.f32.mrf.mxu3 }
 0x2ad   : > { %v1073_v28 = vmax.f32 %v2276_v5, %v2278_v6 }
 0x2b1   : > { %1679 = vmatmul.msk.bf16.gmra.mxu2 %vm818_vm12, %v811_v49  ;;  %1695 = vmatmul.msk.bf16.gmra.mxu3 %vm818_vm12, %v811_v49 }
 0x2b4   : > { %v2282_v7 = vpop.f32.mrf.mxu2  ;;  %v2284_v8 = vpop.f32.mrf.mxu3 }
 0x2b5   : > { %v1076_v16 = vmax.f32 %v2282_v7, %v2284_v8 }
 0x2bc   : > { %v2286_v9 = vpop.f32.mrf.mxu2  ;;  %v2288_v10 = vpop.f32.mrf.mxu3 }
 0x2bd   : > { %v1079_v22 = vmax.f32 %v2286_v9, %v2288_v10 }
 0x2c1   : > { %1680 = vmatmul.msk.bf16.gmra.mxu2 %vm818_vm12, %v813_v51  ;;  %1696 = vmatmul.msk.bf16.gmra.mxu3 %vm818_vm12, %v813_v51 }
 0x2c4   : > { %v2292_v11 = vpop.f32.mrf.mxu2  ;;  %v2294_v12 = vpop.f32.mrf.mxu3 }
 0x2c5   : > { %v1082_v13 = vmax.f32 %v2292_v11, %v2294_v12 }
 0x2c7   : > { %1083 = vmax.xlane.f32.xlu1 %v1082_v13 }
 0x2cc   : > { %v2298_v14 = vpop.f32.mrf.mxu2  ;;  %v2300_v15 = vpop.f32.mrf.mxu3 }
 0x2cd   : > { %v1085_v17 = vmax.f32 %v2298_v14, %v2300_v15 }
 0x2cf   : > { %1077 = vmax.xlane.f32.xlu1 %v1076_v16  ;;  %1086 = vmax.xlane.f32.xlu2 %v1085_v17 }
 0x2d1   : > { %1681 = vmatmul.msk.bf16.gmra.mxu2 %vm818_vm12, %v815_v53  ;;  %1697 = vmatmul.msk.bf16.gmra.mxu3 %vm818_vm12, %v815_v53 }
 0x2d4   : > { %v2308_v19 = vpop.f32.mrf.mxu2  ;;  %v2310_v20 = vpop.f32.mrf.mxu3 }
 0x2d5   : > { %v1088_v23 = vmax.f32 %v2308_v19, %v2310_v20 }
 0x2d7   : > { %1071 = vmax.xlane.f32.xlu1 %v1070_v21  ;;  %1080 = vmax.xlane.f32.xlu2 %v1079_v22 }
 0x2d8   : > { %1089 = vmax.xlane.f32.xlu0 %v1088_v23 }
 0x2dc   : > { %v2318_v24 = vpop.f32.mrf.mxu2  ;;  %v2320_v25 = vpop.f32.mrf.mxu3 }
 0x2dd   : > { %v1091_v43 = vmax.f32 %v2318_v24, %v2320_v25 }
 0x2df   : > { %1065 = vmax.xlane.f32.xlu1 %v1064_v27  ;;  %1074 = vmax.xlane.f32.xlu2 %v1073_v28 }
 0x2e1   : > { %1682 = vmatmul.msk.bf16.gmra.mxu2 %vm818_vm12, %v817_v29  ;;  %1698 = vmatmul.msk.bf16.gmra.mxu3 %vm818_vm12, %v817_v29 }
 0x2e4   : > { %v2333_v30 = vpop.f32.mrf.mxu2  ;;  %v2335_v31 = vpop.f32.mrf.mxu3 }
 0x2e5   : > { %v1094_v22 = vmax.f32 %v2333_v30, %v2335_v31 }
 0x2e7   : > { %1059 = vmax.xlane.f32.xlu1 %v1058_v32  ;;  %1068 = vmax.xlane.f32.xlu2 %v1067_v33 }
 0x2ec   : > { %v2341_v34 = vpop.f32.mrf.mxu2  ;;  %v2343_v35 = vpop.f32.mrf.mxu3 }
 0x2ed   : > { %v1097_v46 = vmax.f32 %v2341_v34, %v2343_v35 }
 0x2ef   : > { %1053 = vmax.xlane.f32.xlu1 %v1052_v36  ;;  %1062 = vmax.xlane.f32.xlu2 %v1061_v37 }
 0x2f4   : > { %v2349_v38 = vpop.f32.mrf.mxu2  ;;  %v2351_v39 = vpop.f32.mrf.mxu3 }
 0x2f5   : > { %2764 = vst [vmem:[#allocation12_spill] sm:$0xff] %v2349_v38 }
 0x2f6   : > { %2765 = vst [vmem:[#allocation13_spill] sm:$0xff] %v2351_v39 }
 0x2f7   : > { %1056 = vmax.xlane.f32.xlu2 %v1055_v40 }
 0x2fc   : > { %v2355_v41 = vpop.f32.mrf.mxu2  ;;  %v2357_v42 = vpop.f32.mrf.mxu3 }
 0x2ff   : > { %1092 = vmax.xlane.f32.xlu2 %v1091_v43 }
 0x304   : > { %v2361_v44 = vpop.f32.mrf.mxu2  ;;  %v2363_v45 = vpop.f32.mrf.mxu3 }
 0x307   : > { %1098 = vmax.xlane.f32.xlu2 %v1097_v46 }
 0x308   : > { %718 = vperm.xlu1 %1764, %v712_v18  }
 0x30c   : > { %v2370_v47 = vpop.f32.mrf.mxu2  ;;  %v2372_v48 = vpop.f32.mrf.mxu3 }
 0x314   : > { %v2374_v49 = vpop.f32.mrf.mxu2  ;;  %v2376_v50 = vpop.f32.mrf.mxu3 }
 0x315   : > { %v1112_v27 = vmax.f32 %v2374_v49, %v2376_v50 }
 0x31c   : > { %v2378_v51 = vpop.f32.mrf.mxu2  ;;  %v2380_v52 = vpop.f32.mrf.mxu3 }
 0x31d   : > { %v1115_v53 = vmax.f32 %v2378_v51, %v2380_v52 }
 0x31f   : > { %1116 = vmax.xlane.f32.xlu2 %v1115_v53 }
 0x324   : > { %v2384_v54 = vpop.f32.mrf.mxu2  ;;  %v2386_v13 = vpop.f32.mrf.mxu3 }
 0x325   : > { %v1118_v40 = vmax.f32 %v2384_v54, %v2386_v13 }
 0x32c   : > { %v2388_v16 = vpop.f32.mrf.mxu2  ;;  %v2390_v17 = vpop.f32.mrf.mxu3 }
 0x32d   : > { %v1121_v21 = vmax.f32 %v2388_v16, %v2390_v17 }
 0x32f   : > { %1122 = vmax.xlane.f32.xlu2 %v1121_v21 }
 0x332   : > { %1095 = vmax.xlane.f32.xlu1 %v1094_v22 }
 0x334   : > { %v2396_v23 = vpop.f32.mrf.mxu2  ;;  %v2398_v26 = vpop.f32.mrf.mxu3 }
 0x335   : > { %2766 = vst [vmem:[#allocation14_spill] sm:$0xff] %v2398_v26 }
 0x33a   : > { %v1084_v28 = vpop.xlane.xlu1 %1083  ;;  %1113 = vmax.xlane.f32.xlu1 %v1112_v27 }
 0x33b   : > { %v1168_v36 = vsub.f32 %v2292_v11, %v1084_v28  ;;  %v1169_v37 = vsub.f32 %v2294_v12, %v1084_v28 }
 0x33c   : > { %v2402_v29 = vpop.f32.mrf.mxu2  ;;  %v2404_v32 = vpop.f32.mrf.mxu3 }
 0x33d   : > { %2767 = vst [vmem:[#allocation15_spill] sm:$0xff] %v2402_v29  ;;  %v1127_v33 = vmax.f32 %v2402_v29, %v2404_v32  ;;  %v1252_v18 = vmul.f32 1.442695, %v1168_v36  ;;  %v1254_v22 = vmul.f32 1.442695, %v1169_v37  ;;  %v1124_v36 = vmax.f32 %v2396_v23, %v2398_v26 }
 0x33e   : > { %2768 = vst [vmem:[#allocation16_spill] sm:$0xff] %v2404_v32 }
 0x33f   : > { %1128 = vmax.xlane.f32.xlu2 %v1127_v33  ;;  %1766 = vpow2.f32 %v1252_v18 }
 0x340   : > { %1768 = vpow2.f32 %v1254_v22 }
 0x342   : > { %v1078_v43 = vpop.xlane.xlu1 %1077  ;;  %v1087_v46 = vpop.xlane.xlu2 %1086  ;;  %1119 = vmax.xlane.f32.xlu1 %v1118_v40 }
 0x343   : > { %v1170_v53 = vsub.f32 %v2298_v14, %v1087_v46  ;;  %v1171_v21 = vsub.f32 %v2300_v15, %v1087_v46  ;;  %v1164_v12 = vsub.f32 %v2282_v7, %v1078_v43  ;;  %v1165_v28 = vsub.f32 %v2284_v8, %v1078_v43 }
 0x344   : > { %v2414_v27 = vpop.f32.mrf.mxu2  ;;  %v2416_v32 = vpop.f32.mrf.mxu3 }
 0x345   : > { %v1256_v11 = vmul.f32 1.442695, %v1170_v53  ;;  %v1258_v33 = vmul.f32 1.442695, %v1171_v21  ;;  %v1244_v37 = vmul.f32 1.442695, %v1164_v12  ;;  %v1767_v21 = vpop.eup %1766 }
 0x346   : > { %v1246_v53 = vmul.f32 1.442695, %v1165_v28  ;;  %v1769_v22 = vpop.eup %1768  ;;  %v1130_v28 = vmax.f32 %v2414_v27, %v2416_v32 }
 0x347   : > { %1770 = vpow2.f32 %v1256_v11 }
 0x348   : > { %1772 = vpow2.f32 %v1258_v33 }
 0x349   : > { %1774 = vpow2.f32 %v1244_v37 }
 0x34a   : > { %v1072_v14 = vpop.xlane.xlu1 %1071  ;;  %v1081_v15 = vpop.xlane.xlu2 %1080  ;;  %1125 = vmax.xlane.f32.xlu1 %v1124_v36  ;;  %1776 = vpow2.f32 %v1246_v53 }
 0x34b   : > { %v1166_v40 = vsub.f32 %v2286_v9, %v1081_v15  ;;  %v1167_v46 = vsub.f32 %v2288_v10, %v1081_v15  ;;  %v1160_v12 = vsub.f32 %v2272_v3, %v1072_v14  ;;  %v1161_v10 = vsub.f32 %v2274_v4, %v1072_v14 }
 0x34c   : > { %v2424_v18 = vpop.f32.mrf.mxu2  ;;  %v2426_v7 = vpop.f32.mrf.mxu3 }
 0x34d   : > { %v1248_v8 = vmul.f32 1.442695, %v1166_v40  ;;  %v1133_v43 = vmax.f32 %v2424_v18, %v2426_v7  ;;  %v1250_v11 = vmul.f32 1.442695, %v1167_v46  ;;  %v1771_v33 = vpop.eup %1770  ;;  %v1236_v37 = vmul.f32 1.442695, %v1160_v12 }
 0x34e   : > { %v1773_v9 = vpop.eup %1772  ;;  %v2434_v36 = vpack.c.bf16 %v1771_v33, %v1767_v21 }
 0x34f   : > { %1134 = vmax.xlane.f32.xlu2 %v1133_v43  ;;  %1778 = vpow2.f32 %v1248_v8  ;;  %v2436_v15 = vpack.c.bf16 %v1773_v9, %v1769_v22  ;;  %v1238_v43 = vmul.f32 1.442695, %v1161_v10  ;;  %v1775_v14 = vpop.eup %1774 }
 0x350   : > { %1780 = vpow2.f32 %v1250_v11  ;;  %v1777_v33 = vpop.eup %1776 }
 0x351   : > { %1782 = vpow2.f32 %v1236_v37 }
 0x352   : > { %v1066_v40 = vpop.xlane.xlu1 %1065  ;;  %v1075_v46 = vpop.xlane.xlu2 %1074  ;;  %1131 = vmax.xlane.f32.xlu1 %v1130_v28  ;;  %1784 = vpow2.f32 %v1238_v43 }
 0x353   : > { %v1162_v3 = vsub.f32 %v2276_v5, %v1075_v46  ;;  %v1163_v53 = vsub.f32 %v2278_v6, %v1075_v46  ;;  %v1156_v11 = vsub.f32 %v2262_v63, %v1066_v40  ;;  %v1157_v12 = vsub.f32 %v2264_v0, %v1066_v40 }
 0x354   : > { %v2440_v29 = vpop.f32.mrf.mxu2  ;;  %v2442_v4 = vpop.f32.mrf.mxu3 }
 0x355   : > { %v1240_v21 = vmul.f32 1.442695, %v1162_v3  ;;  %v1242_v8 = vmul.f32 1.442695, %v1163_v53  ;;  %v1779_v22 = vpop.eup %1778  ;;  %v1136_v5 = vmax.f32 %v2440_v29, %v2442_v4  ;;  %v1228_v3 = vmul.f32 1.442695, %v1156_v11 }
 0x356   : > { %v1781_v9 = vpop.eup %1780  ;;  %v2448_v6 = vpack.c.bf16 %v1779_v22, %v1775_v14  ;;  %v1230_v43 = vmul.f32 1.442695, %v1157_v12 }
 0x357   : > { %1786 = vpow2.f32 %v1240_v21  ;;  %v2450_v10 = vpack.c.bf16 %v1781_v9, %v1777_v33  ;;  %v1783_v40 = vpop.eup %1782  ;;  %v1706_v9 = vld [vmem:[%s2740_s3 + $0x8] sm:$0xff] }
 0x358   : > { %1788 = vpow2.f32 %v1242_v8  ;;  %v1785_v33 = vpop.eup %1784  ;;  %1664 = vmatmul.msk.bf16.gmra.mxu0 %vm445_vm0, %v1706_v9  ;;  %1666 = vmatmul.msk.bf16.gmra.mxu1 %vm445_vm0, %v1706_v9 }
 0x359   : > { %1790 = vpow2.f32 %v1228_v3 }
 0x35a   : > { %v1060_v28 = vpop.xlane.xlu1 %1059  ;;  %v1069_v46 = vpop.xlane.xlu2 %1068  ;;  %1137 = vmax.xlane.f32.xlu1 %v1136_v5  ;;  %1792 = vpow2.f32 %v1230_v43 }
 0x35b   : > { %v1158_v37 = vsub.f32 %v2266_v1, %v1069_v46  ;;  %v1159_v63 = vsub.f32 %v2268_v2, %v1069_v46  ;;  %v1152_v11 = vsub.f32 %v2252_v59, %v1060_v28  ;;  %v1153_v2 = vsub.f32 %v2254_v60, %v1060_v28 }
 0x35c   : > { %v2454_v53 = vpop.f32.mrf.mxu2  ;;  %v2456_v0 = vpop.f32.mrf.mxu3 }
 0x35d   : > { %v1232_v14 = vmul.f32 1.442695, %v1158_v37  ;;  %v1139_v21 = vmax.f32 %v2454_v53, %v2456_v0  ;;  %v1234_v8 = vmul.f32 1.442695, %v1159_v63  ;;  %v1787_v22 = vpop.eup %1786  ;;  %v1220_v59 = vmul.f32 1.442695, %v1152_v11 }
 0x35e   : > { %v1789_v1 = vpop.eup %1788  ;;  %v2465_v12 = vpack.c.bf16 %v1787_v22, %v1783_v40  ;;  %v1222_v28 = vmul.f32 1.442695, %v1153_v2 }
 0x35f   : > { %1140 = vmax.xlane.f32.xlu2 %v1139_v21  ;;  %1794 = vpow2.f32 %v1232_v14  ;;  %v2467_v5 = vpack.c.bf16 %v1789_v1, %v1785_v33  ;;  %v1791_v40 = vpop.eup %1790 }
 0x360   : > { %1796 = vpow2.f32 %v1234_v8  ;;  %v1793_v8 = vpop.eup %1792 }
 0x361   : > { %1798 = vpow2.f32 %v1220_v59  ;;  %v1106_v59 = vmax.f32 %v2361_v44, %v2363_v45 }
 0x362   : > { %v1054_v46 = vpop.xlane.xlu1 %1053  ;;  %v1063_v37 = vpop.xlane.xlu2 %1062  ;;  %1800 = vpow2.f32 %v1222_v28 }
 0x363   : > { %v1154_v3 = vsub.f32 %v2256_v61, %v1063_v37  ;;  %v1155_v60 = vsub.f32 %v2258_v62, %v1063_v37  ;;  %v1148_v14 = vsub.f32 %v2242_v55, %v1054_v46  ;;  %v1149_v22 = vsub.f32 %v2244_v56, %v1054_v46 }
 0x364   : > { %v2473_v63 = vpop.f32.mrf.mxu2  ;;  %v2475_v43 = vpop.f32.mrf.mxu3 }
 0x365   : > { %v1224_v21 = vmul.f32 1.442695, %v1154_v3  ;;  %v1142_v33 = vmax.f32 %v2473_v63, %v2475_v43  ;;  %v1226_v11 = vmul.f32 1.442695, %v1155_v60  ;;  %v1795_v1 = vpop.eup %1794  ;;  %v1212_v2 = vmul.f32 1.442695, %v1148_v14 }
 0x366   : > { %v1797_v61 = vpop.eup %1796  ;;  %v2481_v62 = vpack.c.bf16 %v1795_v1, %v1791_v40  ;;  %v1214_v55 = vmul.f32 1.442695, %v1149_v22 }
 0x367   : > { %1143 = vmax.xlane.f32.xlu1 %v1142_v33  ;;  %1802 = vpow2.f32 %v1224_v21  ;;  %v2483_v9 = vpack.c.bf16 %v1797_v61, %v1793_v8  ;;  %v1799_v60 = vpop.eup %1798 }
 0x368   : > { %1804 = vpow2.f32 %v1226_v11  ;;  %v1801_v21 = vpop.eup %1800 }
 0x369   : > { %1806 = vpow2.f32 %v1212_v2 }
 0x36a   : > { %v1057_v37 = vpop.xlane.xlu2 %1056  ;;  %1808 = vpow2.f32 %v1214_v55 }
 0x36b   : > { %v1150_v3 = vsub.f32 %v2246_v57, %v1057_v37  ;;  %v1151_v26 = vsub.f32 %v2248_v58, %v1057_v37  ;;  %v713_v37 = vld [vmem:[%s2741_s4 + $0x8] sm:$0xff] }
 0x36c   : > { %v2487_v56 = vpop.f32.mrf.mxu2  ;;  %v2489_v46 = vpop.f32.mrf.mxu3 }
 0x36d   : > { %v1216_v28 = vmul.f32 1.442695, %v1150_v3  ;;  %v1218_v40 = vmul.f32 1.442695, %v1151_v26  ;;  %v1145_v14 = vmax.f32 %v2487_v56, %v2489_v46  ;;  %v1803_v33 = vpop.eup %1802  ;;  %v1100_v26 = vmax.f32 %v2349_v38, %v2351_v39  ;;  %v714_v3 = vld [vmem:[%s2741_s4 + $0x10] sm:$0xff] }
 0x36e   : > { %v1805_v57 = vpop.eup %1804  ;;  %v2495_v58 = vpack.c.bf16 %v1803_v33, %v1799_v60 }
 0x36f   : > { %1810 = vpow2.f32 %v1216_v28  ;;  %1107 = vmax.xlane.f32.xlu1 %v1106_v59  ;;  %1146 = vmax.xlane.f32.xlu2 %v1145_v14  ;;  %v2497_v8 = vpack.c.bf16 %v1805_v57, %v1801_v21  ;;  %v1807_v22 = vpop.eup %1806 }
 0x370   : > { %1812 = vpow2.f32 %v1218_v40  ;;  %v1809_v11 = vpop.eup %1808  ;;  %v1090_v40 = vpop.xlane.xlu0 %1089 }
 0x371   : > { %v1172_v33 = vsub.f32 %v2308_v19, %v1090_v40 }
 0x372   : > { %v1093_v59 = vpop.xlane.xlu2 %1092 }
 0x373   : > { %v1260_v39 = vmul.f32 1.442695, %v1172_v33  ;;  %v1175_v38 = vsub.f32 %v2320_v25, %v1093_v59  ;;  %v1109_v33 = vmax.f32 %v2370_v47, %v2372_v48 }
 0x375   : > { %v1811_v1 = vpop.eup %1810 }
 0x376   : > { %v1813_v61 = vpop.eup %1812  ;;  %v2501_v2 = vpack.c.bf16 %v1811_v1, %v1807_v22  ;;  %v1173_v22 = vsub.f32 %v2310_v20, %v1090_v40 }
 0x377   : > { %1101 = vmax.xlane.f32.xlu1 %v1100_v26  ;;  %v2503_v55 = vpack.c.bf16 %v1813_v61, %v1809_v11  ;;  %v1174_v61 = vsub.f32 %v2318_v24, %v1093_v59 }
 0x379   : > { %v1264_v40 = vmul.f32 1.442695, %v1174_v61 }
 0x37a   : > { %v2511_v60 = vpop.permute.xlu1 %718  ;;  %v1099_v28 = vpop.xlane.xlu2 %1098 }
 0x37b   : > { %v1178_v14 = vsub.f32 %v2341_v34, %v1099_v28  ;;  %v1179_v21 = vsub.f32 %v2343_v35, %v1099_v28  ;;  %v1262_v28 = vmul.f32 1.442695, %v1173_v22 }
 0x37d   : > { %v1272_v57 = vmul.f32 1.442695, %v1178_v14  ;;  %v1274_v11 = vmul.f32 1.442695, %v1179_v21  ;;  %v1266_v14 = vmul.f32 1.442695, %v1175_v38 }
 0x37f   : > { %1814 = vpow2.f32 %v1272_v57 }
 0x380   : > { %1816 = vpow2.f32 %v1274_v11 }
 0x385   : > { %v1815_v25 = vpop.eup %1814 }
 0x387   : > { %723 = vperm.xlu2 %1763, %v713_v37  }
 0x390   : > { %728 = vperm.xlu1 %1764, %v714_v3  }
 0x392   : > { %v1117_v1 = vpop.xlane.xlu2 %1116 }
 0x393   : > { %v1190_v34 = vsub.f32 %v2378_v51, %v1117_v1  ;;  %v1191_v20 = vsub.f32 %v2380_v52, %v1117_v1  ;;  %v1817_v52 = vpop.eup %1816 }
 0x395   : > { %v1296_v24 = vmul.f32 1.442695, %v1190_v34 }
 0x3a5   : > { %v1096_v26 = vpop.xlane.xlu1 %1095 }
 0x3a6   : > { %v1176_v37 = vsub.f32 %v2333_v30, %v1096_v26  ;;  %v1177_v3 = vsub.f32 %v2335_v31, %v1096_v26  ;;  %v1298_v30 = vmul.f32 1.442695, %v1191_v20  ;;  %v1123_v31 = vpop.xlane.xlu2 %1122  ;;  %v1103_v20 = vmax.f32 %v2355_v41, %v2357_v42 }
 0x3a7   : > { %v1194_v38 = vsub.f32 %v2388_v16, %v1123_v31  ;;  %v1195_v1 = vsub.f32 %v2390_v17, %v1123_v31 }
 0x3a8   : > { %v1268_v35 = vmul.f32 1.442695, %v1176_v37  ;;  %v1270_v19 = vmul.f32 1.442695, %v1177_v3 }
 0x3a9   : > { %v1304_v3 = vmul.f32 1.442695, %v1194_v38  ;;  %v1306_v34 = vmul.f32 1.442695, %v1195_v1  ;;  %v715_v1 = vld [vmem:[%s2741_s4 + $0x18] sm:$0xff] }
 0x3aa   : > { %1818 = vpow2.f32 %v1268_v35 }
 0x3ab   : > { %1820 = vpow2.f32 %v1270_v19 }
 0x3ac   : > { %1822 = vpow2.f32 %v1260_v39 }
 0x3ad   : > { %1824 = vpow2.f32 %v1262_v28  ;;  %v1114_v21 = vpop.xlane.xlu1 %1113 }
 0x3ae   : > { %1826 = vpow2.f32 %v1264_v40  ;;  %v1188_v51 = vsub.f32 %v2374_v49, %v1114_v21  ;;  %v1189_v59 = vsub.f32 %v2376_v50, %v1114_v21 }
 0x3af   : > { %1828 = vpow2.f32 %v1266_v14 }
 0x3b0   : > { %v1819_v57 = vpop.eup %1818  ;;  %1830 = vpow2.f32 %v1296_v24  ;;  %v1292_v39 = vmul.f32 1.442695, %v1188_v51  ;;  %v1294_v22 = vmul.f32 1.442695, %v1189_v59  ;;  %1110 = vmax.xlane.f32.xlu2 %v1109_v33 }
 0x3b1   : > { %v1821_v11 = vpop.eup %1820  ;;  %1832 = vpow2.f32 %v1298_v30  ;;  %v2529_v26 = vpack.c.bf16 %v1815_v25, %v1819_v57 }
 0x3b2   : > { %v1823_v49 = vpop.eup %1822  ;;  %1834 = vpow2.f32 %v1292_v39  ;;  %v2531_v50 = vpack.c.bf16 %v1817_v52, %v1821_v11 }
 0x3b3   : > { %v1825_v61 = vpop.eup %1824  ;;  %1836 = vpow2.f32 %v1294_v22  ;;  %1376 = vmatpush.bf16.xpose.msra.mxu0 %v2529_v26  ;;  %v2557_v22 = vpop.xlane.xlu2 %1128 }
 0x3b4   : > { %v1827_v37 = vpop.eup %1826  ;;  %1395 = vmatpush.bf16.xpose.msra.mxu1 %v2531_v50  ;;  %1838 = vpow2.f32 %v1304_v3 }
 0x3b5   : > { %v1829_v16 = vpop.eup %1828  ;;  %v1120_v35 = vpop.xlane.xlu1 %1119  ;;  %1840 = vpow2.f32 %v1306_v34  ;;  %v2539_v21 = vpack.c.bf16 %v1827_v37, %v1823_v49 }
 0x3b6   : > { %v1831_v19 = vpop.eup %1830  ;;  %v1192_v17 = vsub.f32 %v2384_v54, %v1120_v35  ;;  %v1193_v28 = vsub.f32 %v2386_v13, %v1120_v35  ;;  %v2543_v51 = vpack.c.bf16 %v1829_v16, %v1825_v61  ;;  %v761_v35 = vpop.f32.mrf.mxu0 }
 0x3b7   : > { %v1833_v40 = vpop.eup %1832 }
 0x3b8   : > { %v1835_v14 = vpop.eup %1834  ;;  %v1300_v24 = vmul.f32 1.442695, %v1192_v17  ;;  %v1302_v30 = vmul.f32 1.442695, %v1193_v28  ;;  %1104 = vmax.xlane.f32.xlu2 %v1103_v20  ;;  %v780_v17 = vpop.f32.mrf.mxu1 }
 0x3b9   : > { %v1837_v31 = vpop.eup %1836  ;;  %v2541_v25 = vpack.c.bf16 %v1831_v19, %v1835_v14 }
 0x3ba   : > { %1842 = vpow2.f32 %v1300_v24  ;;  %v2545_v54 = vpack.c.bf16 %v1833_v40, %v1837_v31  ;;  %v1839_v13 = vpop.eup %1838 }
 0x3bb   : > { %1844 = vpow2.f32 %v1302_v30  ;;  %1377 = vmatpush.bf16.xpose.msra.mxu0 %v2539_v21  ;;  %v1841_v59 = vpop.eup %1840 }
 0x3bc   : > { %1396 = vmatpush.bf16.xpose.msra.mxu1 %v2543_v51 }
 0x3bd   : > { %v2549_v52 = vpop.xlane.xlu1 %1125 }
 0x3c0   : > { %v1843_v33 = vpop.eup %1842 }
 0x3c1   : > { %v1845_v57 = vpop.eup %1844  ;;  %v2551_v38 = vpack.c.bf16 %v1839_v13, %v1843_v33  ;;  %v782_v33 = vpop.f32.mrf.mxu1 }
 0x3c2   : > { %v2553_v39 = vpack.c.bf16 %v1841_v59, %v1845_v57  ;;  %v2566_v49 = vpop.xlane.xlu2 %1134 }
 0x3c3   : > { %1378 = vmatpush.bf16.xpose.msra.mxu0 %v2434_v36 }
 0x3c4   : > { %1397 = vmatpush.bf16.xpose.msra.mxu1 %v2436_v15 }
 0x3c5   : > { %v2559_v11 = vpop.xlane.xlu1 %1131 }
 0x3cb   : > { %1379 = vmatpush.bf16.xpose.msra.mxu0 %v2448_v6 }
 0x3cc   : > { %1398 = vmatpush.bf16.xpose.msra.mxu1 %v2450_v10 }
 0x3cd   : > { %v1138_v61 = vpop.xlane.xlu1 %1137 }
 0x3d0   : > { %733 = vperm.xlu2 %1763, %v715_v1  }
 0x3d2   : > { %v1141_v37 = vpop.xlane.xlu2 %1140 }
 0x3d3   : > { %1380 = vmatpush.bf16.xpose.msra.mxu0 %v2465_v12  ;;  %v1206_v31 = vsub.f32 %v2454_v53, %v1141_v37 }
 0x3d4   : > { %1399 = vmatpush.bf16.xpose.msra.mxu1 %v2467_v5 }
 0x3d5   : > { %v1328_v59 = vmul.f32 1.442695, %v1206_v31 }
 0x3da   : > { %v1144_v3 = vpop.xlane.xlu1 %1143 }
 0x3db   : > { %1381 = vmatpush.bf16.xpose.msra.mxu0 %v2481_v62  ;;  %v1208_v16 = vsub.f32 %v2473_v63, %v1144_v3  ;;  %v1209_v34 = vsub.f32 %v2475_v43, %v1144_v3  ;;  %v1207_v63 = vsub.f32 %v2456_v0, %v1141_v37  ;;  %v1204_v43 = vsub.f32 %v2440_v29, %v1138_v61 }
 0x3dc   : > { %1400 = vmatpush.bf16.xpose.msra.mxu1 %v2483_v9 }
 0x3dd   : > { %v1332_v28 = vmul.f32 1.442695, %v1208_v16  ;;  %v1334_v14 = vmul.f32 1.442695, %v1209_v34  ;;  %v1330_v57 = vmul.f32 1.442695, %v1207_v63  ;;  %v762_v34 = vadd.f32 %v761_v35, %v2511_v60 }
 0x3de   : > { %v1324_v1 = vmul.f32 1.442695, %v1204_v43  ;;  %v2769_v63 = vld [vmem:[#allocation14_spill] sm:$0xff] }
 0x3df   : > { %1846 = vpow2.f32 %v1332_v28  ;;  %v1201_v28 = vsub.f32 %v2416_v32, %v2559_v11  ;;  %v1197_v43 = vsub.f32 %v2769_v63, %v2549_v52 }
 0x3e0   : > { %1848 = vpow2.f32 %v1334_v14 }
 0x3e2   : > { %v1147_v19 = vpop.xlane.xlu2 %1146 }
 0x3e3   : > { %v1210_v20 = vsub.f32 %v2487_v56, %v1147_v19  ;;  %v1211_v40 = vsub.f32 %v2489_v46, %v1147_v19  ;;  %1382 = vmatpush.bf16.xpose.msra.mxu0 %v2495_v58  ;;  %v1205_v56 = vsub.f32 %v2442_v4, %v1138_v61  ;;  %v763_v46 = vpop.f32.mrf.mxu0  ;;  %v1200_v4 = vsub.f32 %v2414_v27, %v2559_v11 }
 0x3e4   : > { %1401 = vmatpush.bf16.xpose.msra.mxu1 %v2497_v8  ;;  %v781_v19 = vadd.f32 %v780_v17, %v2511_v60  ;;  %v1203_v27 = vsub.f32 %v2426_v7, %v2566_v49  ;;  %v1318_v60 = vmul.f32 1.442695, %v1201_v28  ;;  %v1196_v7 = vsub.f32 %v2396_v23, %v2549_v52 }
 0x3e5   : > { %v1336_v24 = vmul.f32 1.442695, %v1210_v20  ;;  %v1338_v30 = vmul.f32 1.442695, %v1211_v40  ;;  %v1847_v53 = vpop.eup %1846  ;;  %v1326_v37 = vmul.f32 1.442695, %v1205_v56  ;;  %v1202_v40 = vsub.f32 %v2424_v18, %v2566_v49 }
 0x3e6   : > { %v1849_v0 = vpop.eup %1848  ;;  %v1316_v32 = vmul.f32 1.442695, %v1200_v4  ;;  %v1308_v23 = vmul.f32 1.442695, %v1196_v7 }
 0x3e7   : > { %1850 = vpow2.f32 %v1336_v24  ;;  %v1320_v11 = vmul.f32 1.442695, %v1202_v40 }
 0x3e8   : > { %1852 = vpow2.f32 %v1338_v30  ;;  %v1322_v30 = vmul.f32 1.442695, %v1203_v27  ;;  %v1108_v27 = vpop.xlane.xlu1 %1107 }
 0x3e9   : > { %1854 = vpow2.f32 %v1328_v59 }
 0x3ea   : > { %v724_v13 = vpop.permute.xlu2 %723  ;;  %1856 = vpow2.f32 %v1330_v57 }
 0x3eb   : > { %1383 = vmatpush.bf16.xpose.msra.mxu0 %v2501_v2  ;;  %v764_v3 = vadd.f32 %v763_v46, %v724_v13  ;;  %v783_v16 = vadd.f32 %v782_v33, %v724_v13  ;;  %1858 = vpow2.f32 %v1324_v1  ;;  %v2770_v46 = vld [vmem:[#allocation15_spill] sm:$0xff]  ;;  %v2771_v33 = vld [vmem:[#allocation16_spill] sm:$0xff] }
 0x3ec   : > { %1402 = vmatpush.bf16.xpose.msra.mxu1 %v2503_v55  ;;  %1860 = vpow2.f32 %v1326_v37  ;;  %v1198_v13 = vsub.f32 %v2770_v46, %v2557_v22  ;;  %v1199_v57 = vsub.f32 %v2771_v33, %v2557_v22 }
 0x3ed   : > { %v1851_v29 = vpop.eup %1850  ;;  %v2594_v14 = vpack.c.bf16 %v764_v3, %v762_v34  ;;  %v2600_v24 = vpack.c.bf16 %v783_v16, %v781_v19  ;;  %1862 = vpow2.f32 %v1316_v32  ;;  %v1184_v32 = vsub.f32 %v2361_v44, %v1108_v27  ;;  %v766_v44 = vpop.f32.mrf.mxu0 }
 0x3ee   : > { %v1853_v61 = vpop.eup %1852  ;;  %v2590_v20 = vpack.c.bf16 %v1851_v29, %v1847_v53  ;;  %1864 = vpow2.f32 %v1318_v60  ;;  %v1310_v53 = vmul.f32 1.442695, %v1197_v43  ;;  %v1312_v1 = vmul.f32 1.442695, %v1198_v13  ;;  %v2773_v13 = vld [vmem:[#allocation13_spill] sm:$0xff] }
 0x3ef   : > { %v2596_v35 = vpack.c.bf16 %v1853_v61, %v1849_v0  ;;  %v1855_v18 = vpop.eup %1854  ;;  %1866 = vpow2.f32 %v1320_v11  ;;  %v1314_v0 = vmul.f32 1.442695, %v1199_v57  ;;  %v1185_v60 = vsub.f32 %v2363_v45, %v1108_v27  ;;  %v785_v57 = vpop.f32.mrf.mxu1 }
 0x3f0   : > { %v1857_v17 = vpop.eup %1856  ;;  %1868 = vpow2.f32 %v1322_v30 }
 0x3f1   : > { %v1859_v31 = vpop.eup %1858  ;;  %1870 = vpow2.f32 %v1308_v23  ;;  %v1286_v11 = vmul.f32 1.442695, %v1185_v60 }
 0x3f2   : > { %1384 = vmatmul.bf16.vlgmr.msra.gmra.mxu0 %v2594_v14  ;;  %v1861_v49 = vpop.eup %1860  ;;  %v2610_v56 = vpack.c.bf16 %v1855_v18, %v1859_v31  ;;  %1872 = vpow2.f32 %v1310_v53  ;;  %v1284_v18 = vmul.f32 1.442695, %v1184_v32 }
 0x3f3   : > { %1414 = vmatpush.bf16.xpose.msrb.mxu0 %v2590_v20  ;;  %1403 = vmatmul.bf16.vlgmr.msra.gmra.mxu1 %v2600_v24  ;;  %v2614_v59 = vpack.c.bf16 %v1857_v17, %v1861_v49  ;;  %v1863_v52 = vpop.eup %1862  ;;  %1874 = vpow2.f32 %v1312_v1  ;;  %v1102_v17 = vpop.xlane.xlu1 %1101  ;;  %v2772_v49 = vld [vmem:[#allocation12_spill] sm:$0xff] }
 0x3f4   : > { %1433 = vmatpush.bf16.xpose.msrb.mxu1 %v2596_v35  ;;  %v1865_v3 = vpop.eup %1864  ;;  %1876 = vpow2.f32 %v1314_v0  ;;  %v1180_v63 = vsub.f32 %v2772_v49, %v1102_v17  ;;  %v1181_v33 = vsub.f32 %v2773_v13, %v1102_v17 }
 0x3f5   : > { %v1867_v37 = vpop.eup %1866  ;;  %1878 = vpow2.f32 %v1284_v18 }
 0x3f6   : > { %v1869_v16 = vpop.eup %1868  ;;  %v2620_v29 = vpack.c.bf16 %v1867_v37, %v1863_v52  ;;  %1880 = vpow2.f32 %v1286_v11  ;;  %v1276_v45 = vmul.f32 1.442695, %v1180_v63  ;;  %v1278_v23 = vmul.f32 1.442695, %v1181_v33 }
 0x3f7   : > { %v2622_v34 = vpack.c.bf16 %v1869_v16, %v1865_v3  ;;  %v1871_v22 = vpop.eup %1870  ;;  %v1516_v33 = vstv %s383_s25  ;;  %s1956_s25 = scalar_lea.hbm %s2747_s10, 128 }
 0x3f8   : > { %v1873_v4 = vpop.eup %1872  ;;  %p1958_p1 = scmp.lt.s32.totalorder %s1956_s25, %s1952_s13 }
 0x3f9   : > { %v1875_v61 = vpop.eup %1874 }
 0x3fa   : > { %v1877_v19 = vpop.eup %1876  ;;  %v2626_v28 = vpack.c.bf16 %v1875_v61, %v1871_v22  ;;  %p1959_p3 = por %p1958_p1, %p1957_p0 }
 0x3fb   : > { %1415 = vmatpush.bf16.xpose.msrb.mxu0 %v2610_v56  ;;  %v2628_v40 = vpack.c.bf16 %v1877_v19, %v1873_v4  ;;  %v1879_v52 = vpop.eup %1878  ;;  %v768_v19 = vpop.f32.mrf.mxu0 }
 0x3fc   : > { %1434 = vmatpush.bf16.xpose.msrb.mxu1 %v2614_v59  ;;  %v1881_v1 = vpop.eup %1880  ;;  %p1960_p4 = pnand %p1959_p3, %p1955_p13 }
 0x402   : > { %v729_v4 = vpop.permute.xlu1 %728 }
 0x403   : > { %1416 = vmatpush.bf16.xpose.msrb.mxu0 %v2620_v29  ;;  %v767_v32 = vadd.f32 %v766_v44, %v729_v4  ;;  %v786_v60 = vadd.f32 %v785_v57, %v729_v4  ;;  %v1901_v4 = vld [vmem:[%s2163_s29 + $0x30] sm:$0xff] }
 0x404   : > { %1435 = vmatpush.bf16.xpose.msrb.mxu1 %v2622_v34 }
 0x40b   : > { %1417 = vmatpush.bf16.xpose.msrb.mxu0 %v2626_v28 }
 0x40c   : > { %1436 = vmatpush.bf16.xpose.msrb.mxu1 %v2628_v40 }
 0x413   : > { %1418 = vmatpush.bf16.xpose.msrb.mxu0 %v2551_v38 }
 0x414   : > { %1437 = vmatpush.bf16.xpose.msrb.mxu1 %v2553_v39 }
 0x41b   : > { %1419 = vmatpush.bf16.xpose.msrb.mxu0 %v2541_v25 }
 0x41c   : > { %1438 = vmatpush.bf16.xpose.msrb.mxu1 %v2545_v54 }
 0x423   : > { %v1111_v30 = vpop.xlane.xlu2 %1110 }
 0x424   : > { %v1186_v31 = vsub.f32 %v2370_v47, %v1111_v30  ;;  %v1187_v7 = vsub.f32 %v2372_v48, %v1111_v30 }
 0x426   : > { %v1288_v43 = vmul.f32 1.442695, %v1186_v31  ;;  %v1290_v46 = vmul.f32 1.442695, %v1187_v7 }
 0x428   : > { %1882 = vpow2.f32 %v1288_v43 }
 0x429   : > { %1884 = vpow2.f32 %v1290_v46 }
 0x42a   : > { %1886 = vpow2.f32 %v1276_v45 }
 0x42b   : > { %v1105_v53 = vpop.xlane.xlu2 %1104  ;;  %1888 = vpow2.f32 %v1278_v23 }
 0x42c   : > { %v1182_v47 = vsub.f32 %v2355_v41, %v1105_v53  ;;  %v1183_v48 = vsub.f32 %v2357_v42, %v1105_v53  ;;  %v787_v41 = vpop.f32.mrf.mxu1 }
 0x42e   : > { %v1883_v3 = vpop.eup %1882  ;;  %v1280_v0 = vmul.f32 1.442695, %v1182_v47  ;;  %v1282_v37 = vmul.f32 1.442695, %v1183_v48 }
 0x42f   : > { %v1885_v16 = vpop.eup %1884  ;;  %v2644_v22 = vpack.c.bf16 %v1883_v3, %v1879_v52 }
 0x430   : > { %1890 = vpow2.f32 %v1280_v0  ;;  %v2646_v61 = vpack.c.bf16 %v1885_v16, %v1881_v1  ;;  %v1887_v27 = vpop.eup %1886  ;;  %v1898_v1 = vld [vmem:[%s2163_s29] sm:$0xff]  ;;  %v1899_v0 = vld [vmem:[%s2163_s29 + $0x10] sm:$0xff] }
 0x431   : > { %1892 = vpow2.f32 %v1282_v37  ;;  %1420 = vmatpush.bf16.xpose.msrb.mxu0 %v2644_v22  ;;  %v1889_v17 = vpop.eup %1888  ;;  %v1900_v16 = vld [vmem:[%s2163_s29 + $0x20] sm:$0xff] }
 0x432   : > { %1439 = vmatpush.bf16.xpose.msrb.mxu1 %v2646_v61 }
 0x433   : > { %v734_v42 = vpop.permute.xlu2 %733 }
 0x434   : > { %v769_v18 = vadd.f32 %v768_v19, %v734_v42  ;;  %v788_v11 = vadd.f32 %v787_v41, %v734_v42 }
 0x436   : > { %v1891_v30 = vpop.eup %1890  ;;  %v1374_v31 = vpack.c.bf16 %v769_v18, %v767_v32  ;;  %v1375_v7 = vpack.c.bf16 %v788_v11, %v786_v60 }
 0x437   : > { %v1893_v49 = vpop.eup %1892  ;;  %v1356_v63 = vpack.c.bf16 %v1891_v30, %v1887_v27 }
 0x438   : > { %1389 = vmatmul.bf16.gmra.mxu0 %v1374_v31  ;;  %1408 = vmatmul.bf16.gmra.mxu1 %v1375_v7  ;;  %v1357_v43 = vpack.c.bf16 %v1893_v49, %v1889_v17 }
 0x439   : > { %1421 = vmatpush.bf16.xpose.msrb.mxu0 %v1356_v63 }
 0x43a   : > { %1440 = vmatpush.bf16.xpose.msrb.mxu1 %v1357_v43 }
 0x441   : > { %1452 = vmatpush.bf16.xpose.msra.mxu0 %v2529_v26 }
 0x442   : > { %1465 = vmatpush.bf16.xpose.msra.mxu1 %v2531_v50 }
 0x448   : > { %1422 = vmatmul.bf16.vlgmr.msrb.gmra.mxu0 %v2594_v14  ;;  %1441 = vmatmul.bf16.vlgmr.msrb.gmra.mxu1 %v2600_v24 }
 0x449   : > { %1453 = vmatpush.bf16.xpose.msra.mxu0 %v2539_v21 }
 0x44a   : > { %1466 = vmatpush.bf16.xpose.msra.mxu1 %v2543_v51 }
 0x451   : > { %1454 = vmatpush.bf16.xpose.msra.mxu0 %v2434_v36 }
 0x452   : > { %1467 = vmatpush.bf16.xpose.msra.mxu1 %v2436_v15 }
 0x458   : > { %1427 = vmatmul.bf16.gmra.mxu0 %v1374_v31  ;;  %1446 = vmatmul.bf16.gmra.mxu1 %v1375_v7 }
 0x459   : > { %1455 = vmatpush.bf16.xpose.msra.mxu0 %v2448_v6 }
 0x45a   : > { %1468 = vmatpush.bf16.xpose.msra.mxu1 %v2450_v10 }
 0x461   : > { %1456 = vmatpush.bf16.xpose.msra.mxu0 %v2465_v12  ;;  %v2011_v12 = vmov 1065369472  }
 0x462   : > { %1469 = vmatpush.bf16.xpose.msra.mxu1 %v2467_v5 }
 0x469   : > { %1457 = vmatpush.bf16.xpose.msra.mxu0 %v2481_v62 }
 0x46a   : > { %1470 = vmatpush.bf16.xpose.msra.mxu1 %v2483_v9 }
 0x46f   : > { %v1385_v36 = vpop.f32.mrf.mxu0 }
 0x470   : > { %v1404_v15 = vpop.f32.mrf.mxu1 }
 0x471   : > { %1458 = vmatpush.bf16.xpose.msra.mxu0 %v2495_v58  ;;  %v1405_v26 = vadd.f32 %v1404_v15, %v1385_v36  ;;  %v1902_v36 = vld [vmem:[%s2163_s29 + $0x8] sm:$0xff] }
 0x472   : > { %1471 = vmatpush.bf16.xpose.msra.mxu1 %v2497_v8 }
 0x477   : > { %v1387_v6 = vpop.f32.mrf.mxu0 }
 0x478   : > { %v1406_v10 = vpop.f32.mrf.mxu1 }
 0x479   : > { %1459 = vmatpush.bf16.xpose.msra.mxu0 %v2501_v2  ;;  %v1407_v5 = vadd.f32 %v1406_v10, %v1387_v6  ;;  %v1904_v10 = vld [vmem:[%s2163_s29 + $0x28] sm:$0xff] }
 0x47a   : > { %1472 = vmatpush.bf16.xpose.msra.mxu1 %v2503_v55 }
 0x480   : > { %1460 = vmatmul.bf16.vlgmr.msra.gmra.mxu0 %v2011_v12 }
 0x481   : > { %1478 = vmatpush.bf16.xpose.msrb.mxu0 %v2590_v20  ;;  %1473 = vmatmul.bf16.vlgmr.msra.gmra.mxu1 %v2011_v12 }
 0x482   : > { %1491 = vmatpush.bf16.xpose.msrb.mxu1 %v2596_v35 }
 0x489   : > { %1479 = vmatpush.bf16.xpose.msrb.mxu0 %v2610_v56 }
 0x48a   : > { %1492 = vmatpush.bf16.xpose.msrb.mxu1 %v2614_v59 }
 0x491   : > { %1480 = vmatpush.bf16.xpose.msrb.mxu0 %v2620_v29 }
 0x492   : > { %1493 = vmatpush.bf16.xpose.msrb.mxu1 %v2622_v34 }
 0x499   : > { %1481 = vmatpush.bf16.xpose.msrb.mxu0 %v2626_v28 }
 0x49a   : > { %1494 = vmatpush.bf16.xpose.msrb.mxu1 %v2628_v40 }
 0x4a1   : > { %1482 = vmatpush.bf16.xpose.msrb.mxu0 %v2551_v38 }
 0x4a2   : > { %1495 = vmatpush.bf16.xpose.msrb.mxu1 %v2553_v39 }
 0x4a9   : > { %1483 = vmatpush.bf16.xpose.msrb.mxu0 %v2541_v25 }
 0x4aa   : > { %1496 = vmatpush.bf16.xpose.msrb.mxu1 %v2545_v54 }
 0x4b1   : > { %1484 = vmatpush.bf16.xpose.msrb.mxu0 %v2644_v22 }
 0x4b2   : > { %1497 = vmatpush.bf16.xpose.msrb.mxu1 %v2646_v61 }
 0x4b5   : > { %v1390_v62 = vpop.f32.mrf.mxu0  ;;  %v1409_v9 = vpop.f32.mrf.mxu1 }
 0x4b6   : > { %v1410_v40 = vadd.f32 %v1409_v9, %v1390_v62 }
 0x4b9   : > { %1485 = vmatpush.bf16.xpose.msrb.mxu0 %v1356_v63 }
 0x4ba   : > { %1498 = vmatpush.bf16.xpose.msrb.mxu1 %v1357_v43 }
 0x4bd   : > { %v1392_v58 = vpop.f32.mrf.mxu0  ;;  %v1411_v8 = vpop.f32.mrf.mxu1 }
 0x4be   : > { %v1412_v46 = vadd.f32 %v1411_v8, %v1392_v58 }
 0x4c0   : > { %1486 = vmatmul.bf16.vlgmr.msrb.gmra.mxu0 %v2011_v12 }
 0x4c1   : > { %1499 = vmatmul.bf16.vlgmr.msrb.gmra.mxu1 %v2011_v12 }
 0x4c5   : > { %v1423_v2 = vpop.f32.mrf.mxu0  ;;  %v1442_v55 = vpop.f32.mrf.mxu1 }
 0x4c6   : > { %v1443_v50 = vadd.f32 %v1442_v55, %v1423_v2 }
 0x4cd   : > { %v1425_v21 = vpop.f32.mrf.mxu0  ;;  %v1444_v51 = vpop.f32.mrf.mxu1 }
 0x4ce   : > { %v1445_v25 = vadd.f32 %v1444_v51, %v1425_v21 }
 0x4d5   : > { %v1428_v38 = vpop.f32.mrf.mxu0  ;;  %v1447_v54 = vpop.f32.mrf.mxu1 }
 0x4d6   : > { %v1448_v39 = vadd.f32 %v1447_v54, %v1428_v38 }
 0x4dd   : > { %v1430_v20 = vpop.f32.mrf.mxu0  ;;  %v1449_v14 = vpop.f32.mrf.mxu1 }
 0x4de   : > { %v1450_v35 = vadd.f32 %v1449_v14, %v1430_v20 }
 0x4fd   : > { %v1461_v24 = vpop.f32.mrf.mxu0 }
 0x4fe   : > { %v1474_v56 = vpop.f32.mrf.mxu1 }
 0x4ff   : > { %v1475_v59 = vadd.f32 %v1474_v56, %v1461_v24 }
 0x501   : > { %1894 = vrcp.f32 %v1475_v59 }
 0x505   : > { %v1463_v29 = vpop.f32.mrf.mxu0 }
 0x506   : > { %v1476_v34 = vpop.f32.mrf.mxu1 }
 0x507   : > { %v1895_v28 = vpop.eup %1894 }
 0x508   : > { %v1506_v13 = vperm.slane %v1895_v28, 0 }
 0x50a   : > { %v1508_v44 = vmul.f32 %v1506_v13, %v1405_v26  ;;  %v1510_v57 = vmul.f32 %v1506_v13, %v1407_v5  ;;  %v1512_v45 = vmul.f32 %v1506_v13, %v1410_v40  ;;  %v1514_v23 = vmul.f32 %v1506_v13, %v1412_v46  ;;  %v1903_v26 = vld [vmem:[%s2163_s29 + $0x18] sm:$0xff] }
 0x50b   : > { %v1905_v5 = vld [vmem:[%s2163_s29 + $0x38] sm:$0xff] }
 0x50c   : > { %v1517_v53 = vmul.f32 %v1516_v33, %v1508_v44  ;;  %v1519_v52 = vmul.f32 %v1516_v33, %v1510_v57  ;;  %v1521_v47 = vmul.f32 %v1516_v33, %v1512_v45  ;;  %v1523_v48 = vmul.f32 %v1516_v33, %v1514_v23 }
 0x50e   : > { %v1525_v3 = vadd.f32 %v1898_v1, %v1517_v53  ;;  %v1527_v37 = vadd.f32 %v1899_v0, %v1519_v52  ;;  %v1529_v22 = vadd.f32 %v1900_v16, %v1521_v47  ;;  %v1531_v61 = vadd.f32 %v1901_v4, %v1523_v48 }
 0x510   : > { %1533 = vst [vmem:[%s2688_s14] sm:$0xff] %v1525_v3 }
 0x511   : > { %1535 = vst [vmem:[%s2688_s14 + $0x10] sm:$0xff] %v1527_v37 }
 0x512   : > { %1537 = vst [vmem:[%s2688_s14 + $0x20] sm:$0xff] %v1529_v22 }
 0x513   : > { %1539 = vst [vmem:[%s2688_s14 + $0x30] sm:$0xff] %v1531_v61 }
 0x53d   : > { %v1487_v19 = vpop.f32.mrf.mxu0 }
 0x53e   : > { %v1500_v41 = vpop.f32.mrf.mxu1 }
 0x53f   : > { %v1501_v42 = vadd.f32 %v1500_v41, %v1487_v19 }
 0x541   : > { %1896 = vrcp.f32 %v1501_v42 }
 0x545   : > { %v1489_v27 = vpop.f32.mrf.mxu0 }
 0x546   : > { %v1502_v32 = vpop.f32.mrf.mxu1 }
 0x547   : > { %v1897_v60 = vpop.eup %1896 }
 0x548   : > { %v1507_v18 = vperm.slane %v1897_v60, 0 }
 0x54a   : > { %v1509_v11 = vmul.f32 %v1507_v18, %v1443_v50  ;;  %v1511_v17 = vmul.f32 %v1507_v18, %v1445_v25  ;;  %v1513_v30 = vmul.f32 %v1507_v18, %v1448_v39  ;;  %v1515_v31 = vmul.f32 %v1507_v18, %v1450_v35 }
 0x54c   : > { %v1518_v7 = vmul.f32 %v1516_v33, %v1509_v11  ;;  %v1520_v49 = vmul.f32 %v1516_v33, %v1511_v17  ;;  %v1522_v63 = vmul.f32 %v1516_v33, %v1513_v30  ;;  %v1524_v43 = vmul.f32 %v1516_v33, %v1515_v31 }
 0x54e   : > { %v1526_v15 = vadd.f32 %v1902_v36, %v1518_v7  ;;  %v1528_v6 = vadd.f32 %v1903_v26, %v1520_v49  ;;  %v1530_v12 = vadd.f32 %v1904_v10, %v1522_v63  ;;  %v1532_v62 = vadd.f32 %v1905_v5, %v1524_v43 }
 0x550   : > { %1534 = vst [vmem:[%s2688_s14 + $0x8] sm:$0xff] %v1526_v15 }
 0x551   : > { %1536 = vst [vmem:[%s2688_s14 + $0x18] sm:$0xff] %v1528_v6 }
 0x552   : > { %1538 = vst [vmem:[%s2688_s14 + $0x28] sm:$0xff] %v1530_v12 }
 0x553   : > { %1540 = vst [vmem:[%s2688_s14 + $0x38] sm:$0xff] %v1532_v62 }
 0x554   : > { %1963 = shalt.err (!%p1960_p4)
}
 0x555   : > { %s2012_s19 = smov 256  }
 0x556   : > { %1710 = dma.vmem_to_hbm [thread:$0]  (%p2121_p11), %s1555_s11, 1024, %s1557_s9, %s1542_s12, %s2012_s19, %s2012_s19, %s2009_s24  }
 0x557 PF: > { %s1571_s14 = sand.u32 1, %s1990_s15   ;;  %p2774_p7 = scmp.ge.s32.totalorder %s2002_s18, 2 }
 0x558   : > { %s1572_s21 = scalar_lea.sflag [#allocation5], %s1571_s14 }
 0x559   : > { %p1717_p5 = pnand %p2774_p7, %p2125_p12 }
 0x55b   : > { %p1718_p8 = pneg %p1717_p5 }
 0x55d   : > { %1985 = dma.done.wait (%p1718_p8), %s1572_s21, 1024  }
 0x55e   : > { %1987 = vsyncadd (%p1718_p8), %s1572_s21, 4294966272  ;;  %s2775_s18 = sld [smem:[#allocation10_spill]]  ;;  %s2778_s15 = smov %s1994_s16 }
 0x55f   : > { %s2776_s22 = sld [smem:[#allocation9_spill]] }
 0x560   : > { %s2777_s17 = sld [smem:[#allocation11_spill]] }
 0x564   : > { %p24_p10 = scmp.ge.s32.totalorder %s2775_s18, 4  }
 0x565   : > { %s2779_s16 = smov %s2776_s22 }
 0x566   :  { %26 = sbr.rel (!%p24_p10) target bundleno = 7 (0x7), region = 109 }
 0x56b   :  { %1578 = vsyncpa [#allocation4], 1 }
 0x56c   :  { %1580 = vsyncpa [#allocation4 + $0x1], 1 }
 0x56d   :  { %1581 = vsyncpa [#allocation5], 1 }
 0x56e   :  { %1583 = vsyncpa [#allocation5 + $0x1], 1 }

</bundles_post_ra>
